<compile_context>
chip_gen: v7x
topology: tpu7x:2x2x1
jax: 0.10.0
libtpu: 0.0.40
codegen_flags: <defaults>
</compile_context>

<pallas_src>
import functools

import jax
import jax.numpy as jnp
import numpy as np
from jax.experimental import pallas as pl
from jax.experimental.pallas import tpu as pltpu

H = 63            # height axis (fixed by the (63, 1) conv)
K1 = 25           # temporal conv kernel width
C1 = 40           # channels after the first conv (== output channels)
POOL_K = 51       # avg-pool window (width)
POOL_S = 5        # avg-pool stride (width)
KEFF = K1 + POOL_K - 1   # 75: effective filter length after folding the pool
BN_EPS = 1e-5


def _elu(v):
    return jnp.where(v > 0, v, jnp.exp(v) - 1.0)


def _stage1_kernel(x_ref, w1t_ref, t1_ref, o_ref, *, pool_out, rows):
    """Fused Conv2d(1,40,(1,25)) + AvgPool2d((1,51),(1,5)) + BN(eval) + ELU.

    One batch-block per grid step.  Rows are (batch, height) pairs, so each
    pooled column p is a single (rows, 75) @ (75, 40) MXU matmul.
    """
    x = x_ref[...]                                  # (rows, Wu) bf16 (cast once, in wrapper)
    w1t = w1t_ref[...]                              # (KEFF, C1) bf16 (pool + BN folded)
    t1b = jnp.broadcast_to(t1_ref[...], (rows, C1))  # hoisted bias broadcast (f32)
    for p in range(pool_out):
        xs = x[:, POOL_S * p:POOL_S * p + KEFF]     # (rows, KEFF) bf16 window
        z = jnp.dot(xs, w1t, preferred_element_type=jnp.float32)   # (rows, C1) f32
        z = _elu(z + t1b)
        o_ref[p] = z.astype(o_ref.dtype)            # (rows, C1) bf16 store


def _stage2_kernel(z_ref, w2_ref, t2_ref, o_ref):
    """Conv2d(40,40,(63,1)) + BN(eval) + ELU as one row-tiled MXU GEMM (K=2520)."""
    y = jnp.dot(z_ref[...], w2_ref[...], preferred_element_type=jnp.float32)  # (TM, C1)
    y = _elu(y + t2_ref[...])
    # Dropout(0.5) is identity in eval mode.
    o_ref[...] = y.astype(o_ref.dtype)


def patch_embedding_tsconv(x, fp):
    """x: (B, 1, 63, W) float32 (NCHW).  Returns (B, 40, 1, pool_out) == tsconv(x)."""
    B, c_in, h_in, W = x.shape
    assert c_in == 1 and h_in == H
    w1out = W - K1 + 1
    P = (w1out - POOL_K) // POOL_S + 1
    assert P >= 1
    Wu = POOL_S * (P - 1) + KEFF                 # width actually consumed

    # Batch blocking: Bblk*H rows per stage-1 grid step.  Bblk=8 keeps the
    # sublane-dim multiple-of-8 constraint and >=2 parallel steps at large B;
    # for small B one full-size block is the lowest-overhead choice.
    if B >= 16:
        bblk = 8
        b_pad = ((B + 7) // 8) * 8
    else:
        bblk = B
        b_pad = B
    nb = b_pad // bblk
    rows = bblk * H

    # Single half-size materialization: squeeze channel, crop width, cast to
    # bf16 once (not per window), flatten (B, H) into rows for the GEMM.
    xb = x[:, 0, :, :Wu].astype(jnp.bfloat16)    # (B, H, Wu)
    if b_pad != B:
        xb = jnp.pad(xb, ((0, b_pad - B), (0, 0), (0, 0)))
    xr = xb.reshape(b_pad * H, Wu)               # (b_pad*H, Wu)

    # Stage 1: output laid out (P, b_pad*H, C1) so each per-p store is one
    # dense (rows, C1) slab.
    z1 = pl.pallas_call(
        functools.partial(_stage1_kernel, pool_out=P, rows=rows),
        out_shape=jax.ShapeDtypeStruct((P, b_pad * H, C1), jnp.bfloat16),
        grid=(nb,),
        in_specs=[pl.BlockSpec((rows, Wu), lambda b: (b, 0)),
                  pl.BlockSpec((KEFF, C1), lambda b: (0, 0)),
                  pl.BlockSpec((1, C1), lambda b: (0, 0))],
        out_specs=pl.BlockSpec((P, rows, C1), lambda b: (0, b, 0)),
        compiler_params=pltpu.CompilerParams(dimension_semantics=("parallel",)),
    )(xr, fp["w1t"], fp["t1"])

    # Relayout for stage 2: rows become (b, p), contraction index h*C1 + c.
    # One small XLA transpose/reshape of the bf16 intermediate (single HBM pass).
    z2 = (z1.reshape(P, b_pad, H, C1)
            .transpose(1, 0, 2, 3)
            .reshape(b_pad * P, H * C1))

    R = b_pad * P
    TM = 256 if R >= 256 else R                  # full dim when small, 256-row tiles otherwise

    y = pl.pallas_call(
        _stage2_kernel,
        out_shape=jax.ShapeDtypeStruct((R, C1), jnp.float32),
        grid=(pl.cdiv(R, TM),),
        in_specs=[pl.BlockSpec((TM, H * C1), lambda i: (i, 0)),
                  pl.BlockSpec((H * C1, C1), lambda i: (0, 0)),
                  pl.BlockSpec((1, C1), lambda i: (0, 0))],
        out_specs=pl.BlockSpec((TM, C1), lambda i: (i, 0)),
        compiler_params=pltpu.CompilerParams(dimension_semantics=("parallel",)),
    )(z2, fp["w2"], fp["t2"])

    # (b_pad*P, C1) -> drop batch padding -> NCHW (B, 40, 1, P).
    y = y.reshape(b_pad, P, C1)[:B]
    return jnp.transpose(y, (0, 2, 1))[:, :, None, :]


def fold_params(p):
    """Offline folding: AvgPool into conv1, BN1/BN2 into conv weights/biases."""
    avg = jnp.ones((POOL_K,), jnp.float32) / POOL_K
    # conv(w1, ones(51)/51), full -> length 75; bias passes through the average.
    w_eff = jax.vmap(lambda r: jnp.convolve(r, avg, mode="full"))(p["w1"])  # (C1, KEFF)
    w1f = p["s1"][:, None] * w_eff                                          # BN1 scale folded
    t1f = p["s1"] * p["b1"] + p["t1"]                                       # BN1 shift folded
    w2f = p["s2"][:, None, None] * p["w2"]                                  # (O, C1, H), BN2 folded
    t2f = p["s2"] * p["b2"] + p["t2"]
    return dict(
        w1t=w1f.T.astype(jnp.bfloat16),                                     # (KEFF, C1)
        t1=t1f.reshape(1, C1).astype(jnp.float32),
        # stage-2 contraction index is h*C1 + c (matches the z2 relayout above)
        w2=jnp.transpose(w2f, (2, 1, 0)).reshape(H * C1, C1).astype(jnp.bfloat16),
        t2=t2f.reshape(1, C1).astype(jnp.float32),
    )


def init_params(key):
    ks = jax.random.split(key, 12)
    f32 = jnp.float32
    w1 = 0.1 * jax.random.normal(ks[0], (C1, K1), f32)        # Conv2d(1,40,(1,25)).weight[:,0,0,:]
    b1 = 0.1 * jax.random.normal(ks[1], (C1,), f32)
    g1 = 1.0 + 0.1 * jax.random.normal(ks[2], (C1,), f32)     # BN1 gamma
    be1 = 0.1 * jax.random.normal(ks[3], (C1,), f32)          # BN1 beta
    m1 = 0.1 * jax.random.normal(ks[4], (C1,), f32)           # BN1 running_mean
    v1 = 1.0 + 0.1 * jnp.abs(jax.random.normal(ks[5], (C1,), f32))  # BN1 running_var
    s1 = g1 / jnp.sqrt(v1 + BN_EPS)
    t1 = be1 - m1 * s1

    w2 = 0.02 * jax.random.normal(ks[6], (C1, C1, H), f32)    # Conv2d(40,40,(63,1)).weight[:,:,:,0]
    b2 = 0.1 * jax.random.normal(ks[7], (C1,), f32)
    g2 = 1.0 + 0.1 * jax.random.normal(ks[8], (C1,), f32)
    be2 = 0.1 * jax.random.normal(ks[9], (C1,), f32)
    m2 = 0.1 * jax.random.normal(ks[10], (C1,), f32)
    v2 = 1.0 + 0.1 * jnp.abs(jax.random.normal(ks[11], (C1,), f32))
    s2 = g2 / jnp.sqrt(v2 + BN_EPS)
    t2 = be2 - m2 * s2
    return dict(w1=w1, b1=b1, s1=s1, t1=t1, w2=w2, b2=b2, s2=s2, t2=t2)


def reference_tsconv(x, p):
    """Plain-JAX f32 reference with identical (eval-mode) semantics, unfused."""
    xs = x[:, 0]                                  # (B, H, W)
    W = xs.shape[-1]
    w1out = W - K1 + 1
    cols = jnp.stack([xs[:, :, k:k + w1out] for k in range(K1)], axis=-1)   # (B,H,w1out,K1)
    y1 = jnp.einsum("bhwk,ck->bchw", cols, p["w1"]) + p["b1"][None, :, None, None]
    P = (w1out - POOL_K) // POOL_S + 1
    pooled = jnp.stack(
        [jnp.mean(y1[..., POOL_S * q:POOL_S * q + POOL_K], axis=-1) for q in range(P)],
        axis=-1)                                                            # (B,C1,H,P)
    z = pooled * p["s1"][None, :, None, None] + p["t1"][None, :, None, None]
    z = jnp.where(z > 0, z, jnp.exp(z) - 1.0)
    y2 = jnp.einsum("och,bchp->bop", p["w2"], z) + p["b2"][None, :, None]
    y2 = y2 * p["s2"][None, :, None] + p["t2"][None, :, None]
    y2 = jnp.where(y2 > 0, y2, jnp.exp(y2) - 1.0)
    return y2[:, :, None, :]                      # (B, C1, 1, P)


if __name__ == "__main__":
    key = jax.random.PRNGKey(0)
    kp, kx = jax.random.split(key)
    params = init_params(kp)
    fp = fold_params(params)
    fwd = jax.jit(patch_embedding_tsconv)

    # Small-batch path (single block per stage).
    B, W = 2, 100                                 # H is fixed at 63 by the (63,1) conv
    x = jax.random.normal(kx, (B, 1, H, W), jnp.float32)
    out = jax.block_until_ready(fwd(x, fp))
    P = ((W - K1 + 1) - POOL_K) // POOL_S + 1
    assert out.shape == (B, C1, 1, P), out.shape
    ref = reference_tsconv(x, params)
    np.testing.assert_allclose(np.asarray(out), np.asarray(ref), rtol=3e-2, atol=3e-2)

    # Batch-blocked path (Bblk=8, multiple parallel grid steps).
    B2 = 16
    x2 = jax.random.normal(jax.random.PRNGKey(1), (B2, 1, H, W), jnp.float32)
    out2 = jax.block_until_ready(fwd(x2, fp))
    assert out2.shape == (B2, C1, 1, P), out2.shape
    ref2 = reference_tsconv(x2, params)
    np.testing.assert_allclose(np.asarray(out2), np.asarray(ref2), rtol=3e-2, atol=3e-2)

    print("KERNEL_OK")
</pallas_src>

<mosaic_0001>
module attributes {stable_mosaic.version = 11 : i64} {
  func.func @_stage1_kernel(%arg0: i32, %arg1: memref<126x100xbf16, #tpu.memory_space<vmem>>, %arg2: memref<75x40xbf16, #tpu.memory_space<vmem>>, %arg3: memref<1x40xf32, #tpu.memory_space<vmem>>, %arg4: memref<6x126x40xbf16, #tpu.memory_space<vmem>>) attributes {dimension_semantics = [#tpu.dimension_semantics<parallel>], iteration_bounds = array<i64: 1>, scalar_prefetch = 0 : i64, scratch_operands = 0 : i64, tpu.core_type = #tpu.core_type<tc>, window_params = [{transform_indices = @transform_0, window_bounds = array<i64: 126, 100>}, {pipeline_mode = #tpu.pipeline_mode<synchronous>, transform_indices = @transform_1, window_bounds = array<i64: 75, 40>}, {pipeline_mode = #tpu.pipeline_mode<synchronous>, transform_indices = @transform_2, window_bounds = array<i64: 1, 40>}, {transform_indices = @transform_3, window_bounds = array<i64: 6, 126, 40>}]} {
    %c0 = arith.constant 0 : index
    %c0_0 = arith.constant 0 : index
    %0 = vector.load %arg1[%c0, %c0_0] : memref<126x100xbf16, #tpu.memory_space<vmem>>, vector<126x100xbf16>
    %c0_1 = arith.constant 0 : index
    %c0_2 = arith.constant 0 : index
    %1 = vector.load %arg2[%c0_1, %c0_2] : memref<75x40xbf16, #tpu.memory_space<vmem>>, vector<75x40xbf16>
    %c0_3 = arith.constant 0 : index
    %c0_4 = arith.constant 0 : index
    %2 = vector.load %arg3[%c0_3, %c0_4] : memref<1x40xf32, #tpu.memory_space<vmem>>, vector<1x40xf32>
    %3 = vector.shape_cast %2 : vector<1x40xf32> to vector<1x40xf32>
    %4 = vector.broadcast %3 : vector<1x40xf32> to vector<126x40xf32>
    %5 = vector.extract_strided_slice %0 {offsets = [0, 0], sizes = [126, 75], strides = [1, 1]} : vector<126x100xbf16> to vector<126x75xbf16>
    %cst = arith.constant dense<0.000000e+00> : vector<126x40xf32>
    %6 = tpu.matmul %5, %1, %cst {dimension_numbers = #tpu.dot_dimension_numbers<[1], [0], [0], [1], [0, 0, 1, 1], [], []>} : vector<126x75xbf16>, vector<75x40xbf16>, vector<126x40xf32> -> vector<126x40xf32>
    %7 = arith.addf %6, %4 : vector<126x40xf32>
    %cst_5 = arith.constant 0.000000e+00 : f32
    %8 = vector.broadcast %cst_5 : f32 to vector<126x40xf32>
    %9 = arith.cmpf ogt, %7, %8 : vector<126x40xf32>
    %10 = math.exp %7 : vector<126x40xf32>
    %cst_6 = arith.constant 1.000000e+00 : f32
    %11 = vector.broadcast %cst_6 : f32 to vector<126x40xf32>
    %12 = arith.subf %10, %11 : vector<126x40xf32>
    %13 = arith.select %9, %7, %12 : vector<126x40xi1>, vector<126x40xf32>
    %14 = arith.truncf %13 : vector<126x40xf32> to vector<126x40xbf16>
    %c0_7 = arith.constant 0 : index
    %c0_8 = arith.constant 0 : index
    %c0_9 = arith.constant 0 : index
    %15 = vector.load %arg4[%c0_7, %c0_8, %c0_9] : memref<6x126x40xbf16, #tpu.memory_space<vmem>>, vector<1x126x40xbf16>
    %16 = vector.shape_cast %15 : vector<1x126x40xbf16> to vector<126x40xbf16>
    %17 = vector.shape_cast %14 : vector<126x40xbf16> to vector<1x126x40xbf16>
    tpu.vector_store %arg4[%c0_7, %c0_8, %c0_9], %17 {strides = array<i32>} : memref<6x126x40xbf16, #tpu.memory_space<vmem>>, vector<1x126x40xbf16>,
    %18 = vector.extract_strided_slice %0 {offsets = [0, 5], sizes = [126, 75], strides = [1, 1]} : vector<126x100xbf16> to vector<126x75xbf16>
    %cst_10 = arith.constant dense<0.000000e+00> : vector<126x40xf32>
    %19 = tpu.matmul %18, %1, %cst_10 {dimension_numbers = #tpu.dot_dimension_numbers<[1], [0], [0], [1], [0, 0, 1, 1], [], []>} : vector<126x75xbf16>, vector<75x40xbf16>, vector<126x40xf32> -> vector<126x40xf32>
    %20 = arith.addf %19, %4 : vector<126x40xf32>
    %cst_11 = arith.constant 0.000000e+00 : f32
    %21 = vector.broadcast %cst_11 : f32 to vector<126x40xf32>
    %22 = arith.cmpf ogt, %20, %21 : vector<126x40xf32>
    %23 = math.exp %20 : vector<126x40xf32>
    %cst_12 = arith.constant 1.000000e+00 : f32
    %24 = vector.broadcast %cst_12 : f32 to vector<126x40xf32>
    %25 = arith.subf %23, %24 : vector<126x40xf32>
    %26 = arith.select %22, %20, %25 : vector<126x40xi1>, vector<126x40xf32>
    %27 = arith.truncf %26 : vector<126x40xf32> to vector<126x40xbf16>
    %c1 = arith.constant 1 : index
    %c0_13 = arith.constant 0 : index
    %c0_14 = arith.constant 0 : index
    %28 = vector.load %arg4[%c1, %c0_13, %c0_14] : memref<6x126x40xbf16, #tpu.memory_space<vmem>>, vector<1x126x40xbf16>
    %29 = vector.shape_cast %28 : vector<1x126x40xbf16> to vector<126x40xbf16>
    %30 = vector.shape_cast %27 : vector<126x40xbf16> to vector<1x126x40xbf16>
    tpu.vector_store %arg4[%c1, %c0_13, %c0_14], %30 {strides = array<i32>} : memref<6x126x40xbf16, #tpu.memory_space<vmem>>, vector<1x126x40xbf16>,
    %31 = vector.extract_strided_slice %0 {offsets = [0, 10], sizes = [126, 75], strides = [1, 1]} : vector<126x100xbf16> to vector<126x75xbf16>
    %cst_15 = arith.constant dense<0.000000e+00> : vector<126x40xf32>
    %32 = tpu.matmul %31, %1, %cst_15 {dimension_numbers = #tpu.dot_dimension_numbers<[1], [0], [0], [1], [0, 0, 1, 1], [], []>} : vector<126x75xbf16>, vector<75x40xbf16>, vector<126x40xf32> -> vector<126x40xf32>
    %33 = arith.addf %32, %4 : vector<126x40xf32>
    %cst_16 = arith.constant 0.000000e+00 : f32
    %34 = vector.broadcast %cst_16 : f32 to vector<126x40xf32>
    %35 = arith.cmpf ogt, %33, %34 : vector<126x40xf32>
    %36 = math.exp %33 : vector<126x40xf32>
    %cst_17 = arith.constant 1.000000e+00 : f32
    %37 = vector.broadcast %cst_17 : f32 to vector<126x40xf32>
    %38 = arith.subf %36, %37 : vector<126x40xf32>
    %39 = arith.select %35, %33, %38 : vector<126x40xi1>, vector<126x40xf32>
    %40 = arith.truncf %39 : vector<126x40xf32> to vector<126x40xbf16>
    %c2 = arith.constant 2 : index
    %c0_18 = arith.constant 0 : index
    %c0_19 = arith.constant 0 : index
    %41 = vector.load %arg4[%c2, %c0_18, %c0_19] : memref<6x126x40xbf16, #tpu.memory_space<vmem>>, vector<1x126x40xbf16>
    %42 = vector.shape_cast %41 : vector<1x126x40xbf16> to vector<126x40xbf16>
    %43 = vector.shape_cast %40 : vector<126x40xbf16> to vector<1x126x40xbf16>
    tpu.vector_store %arg4[%c2, %c0_18, %c0_19], %43 {strides = array<i32>} : memref<6x126x40xbf16, #tpu.memory_space<vmem>>, vector<1x126x40xbf16>,
    %44 = vector.extract_strided_slice %0 {offsets = [0, 15], sizes = [126, 75], strides = [1, 1]} : vector<126x100xbf16> to vector<126x75xbf16>
    %cst_20 = arith.constant dense<0.000000e+00> : vector<126x40xf32>
    %45 = tpu.matmul %44, %1, %cst_20 {dimension_numbers = #tpu.dot_dimension_numbers<[1], [0], [0], [1], [0, 0, 1, 1], [], []>} : vector<126x75xbf16>, vector<75x40xbf16>, vector<126x40xf32> -> vector<126x40xf32>
    %46 = arith.addf %45, %4 : vector<126x40xf32>
    %cst_21 = arith.constant 0.000000e+00 : f32
    %47 = vector.broadcast %cst_21 : f32 to vector<126x40xf32>
    %48 = arith.cmpf ogt, %46, %47 : vector<126x40xf32>
    %49 = math.exp %46 : vector<126x40xf32>
    %cst_22 = arith.constant 1.000000e+00 : f32
    %50 = vector.broadcast %cst_22 : f32 to vector<126x40xf32>
    %51 = arith.subf %49, %50 : vector<126x40xf32>
    %52 = arith.select %48, %46, %51 : vector<126x40xi1>, vector<126x40xf32>
    %53 = arith.truncf %52 : vector<126x40xf32> to vector<126x40xbf16>
    %c3 = arith.constant 3 : index
    %c0_23 = arith.constant 0 : index
    %c0_24 = arith.constant 0 : index
    %54 = vector.load %arg4[%c3, %c0_23, %c0_24] : memref<6x126x40xbf16, #tpu.memory_space<vmem>>, vector<1x126x40xbf16>
    %55 = vector.shape_cast %54 : vector<1x126x40xbf16> to vector<126x40xbf16>
    %56 = vector.shape_cast %53 : vector<126x40xbf16> to vector<1x126x40xbf16>
    tpu.vector_store %arg4[%c3, %c0_23, %c0_24], %56 {strides = array<i32>} : memref<6x126x40xbf16, #tpu.memory_space<vmem>>, vector<1x126x40xbf16>,
    %57 = vector.extract_strided_slice %0 {offsets = [0, 20], sizes = [126, 75], strides = [1, 1]} : vector<126x100xbf16> to vector<126x75xbf16>
    %cst_25 = arith.constant dense<0.000000e+00> : vector<126x40xf32>
    %58 = tpu.matmul %57, %1, %cst_25 {dimension_numbers = #tpu.dot_dimension_numbers<[1], [0], [0], [1], [0, 0, 1, 1], [], []>} : vector<126x75xbf16>, vector<75x40xbf16>, vector<126x40xf32> -> vector<126x40xf32>
    %59 = arith.addf %58, %4 : vector<126x40xf32>
    %cst_26 = arith.constant 0.000000e+00 : f32
    %60 = vector.broadcast %cst_26 : f32 to vector<126x40xf32>
    %61 = arith.cmpf ogt, %59, %60 : vector<126x40xf32>
    %62 = math.exp %59 : vector<126x40xf32>
    %cst_27 = arith.constant 1.000000e+00 : f32
    %63 = vector.broadcast %cst_27 : f32 to vector<126x40xf32>
    %64 = arith.subf %62, %63 : vector<126x40xf32>
    %65 = arith.select %61, %59, %64 : vector<126x40xi1>, vector<126x40xf32>
    %66 = arith.truncf %65 : vector<126x40xf32> to vector<126x40xbf16>
    %c4 = arith.constant 4 : index
    %c0_28 = arith.constant 0 : index
    %c0_29 = arith.constant 0 : index
    %67 = vector.load %arg4[%c4, %c0_28, %c0_29] : memref<6x126x40xbf16, #tpu.memory_space<vmem>>, vector<1x126x40xbf16>
    %68 = vector.shape_cast %67 : vector<1x126x40xbf16> to vector<126x40xbf16>
    %69 = vector.shape_cast %66 : vector<126x40xbf16> to vector<1x126x40xbf16>
    tpu.vector_store %arg4[%c4, %c0_28, %c0_29], %69 {strides = array<i32>} : memref<6x126x40xbf16, #tpu.memory_space<vmem>>, vector<1x126x40xbf16>,
    %70 = vector.extract_strided_slice %0 {offsets = [0, 25], sizes = [126, 75], strides = [1, 1]} : vector<126x100xbf16> to vector<126x75xbf16>
    %cst_30 = arith.constant dense<0.000000e+00> : vector<126x40xf32>
    %71 = tpu.matmul %70, %1, %cst_30 {dimension_numbers = #tpu.dot_dimension_numbers<[1], [0], [0], [1], [0, 0, 1, 1], [], []>} : vector<126x75xbf16>, vector<75x40xbf16>, vector<126x40xf32> -> vector<126x40xf32>
    %72 = arith.addf %71, %4 : vector<126x40xf32>
    %cst_31 = arith.constant 0.000000e+00 : f32
    %73 = vector.broadcast %cst_31 : f32 to vector<126x40xf32>
    %74 = arith.cmpf ogt, %72, %73 : vector<126x40xf32>
    %75 = math.exp %72 : vector<126x40xf32>
    %cst_32 = arith.constant 1.000000e+00 : f32
    %76 = vector.broadcast %cst_32 : f32 to vector<126x40xf32>
    %77 = arith.subf %75, %76 : vector<126x40xf32>
    %78 = arith.select %74, %72, %77 : vector<126x40xi1>, vector<126x40xf32>
    %79 = arith.truncf %78 : vector<126x40xf32> to vector<126x40xbf16>
    %c5 = arith.constant 5 : index
    %c0_33 = arith.constant 0 : index
    %c0_34 = arith.constant 0 : index
    %80 = vector.load %arg4[%c5, %c0_33, %c0_34] : memref<6x126x40xbf16, #tpu.memory_space<vmem>>, vector<1x126x40xbf16>
    %81 = vector.shape_cast %80 : vector<1x126x40xbf16> to vector<126x40xbf16>
    %82 = vector.shape_cast %79 : vector<126x40xbf16> to vector<1x126x40xbf16>
    tpu.vector_store %arg4[%c5, %c0_33, %c0_34], %82 {strides = array<i32>} : memref<6x126x40xbf16, #tpu.memory_space<vmem>>, vector<1x126x40xbf16>,
    return
  }
  func.func @transform_0(%arg0: i32) -> (i32, i32) {
    %c0_i32 = arith.constant 0 : i32
    %c0_i32_0 = arith.constant 0 : i32
    return %arg0, %c0_i32 : i32, i32
  }
  func.func @transform_1(%arg0: i32) -> (i32, i32) {
    %c0_i32 = arith.constant 0 : i32
    %c0_i32_0 = arith.constant 0 : i32
    %c0_i32_1 = arith.constant 0 : i32
    return %c0_i32, %c0_i32_0 : i32, i32
  }
  func.func @transform_2(%arg0: i32) -> (i32, i32) {
    %c0_i32 = arith.constant 0 : i32
    %c0_i32_0 = arith.constant 0 : i32
    %c0_i32_1 = arith.constant 0 : i32
    return %c0_i32, %c0_i32_0 : i32, i32
  }
  func.func @transform_3(%arg0: i32) -> (i32, i32, i32) {
    %c0_i32 = arith.constant 0 : i32
    %c0_i32_0 = arith.constant 0 : i32
    %c0_i32_1 = arith.constant 0 : i32
    return %c0_i32, %arg0, %c0_i32_0 : i32, i32, i32
  }
}

module attributes {stable_mosaic.version = 11 : i64} {
  func.func @_stage2_kernel(%arg0: i32, %arg1: memref<12x2520xbf16, #tpu.memory_space<vmem>>, %arg2: memref<2520x40xbf16, #tpu.memory_space<vmem>>, %arg3: memref<1x40xf32, #tpu.memory_space<vmem>>, %arg4: memref<12x40xf32, #tpu.memory_space<vmem>>) attributes {dimension_semantics = [#tpu.dimension_semantics<parallel>], iteration_bounds = array<i64: 1>, scalar_prefetch = 0 : i64, scratch_operands = 0 : i64, tpu.core_type = #tpu.core_type<tc>, window_params = [{transform_indices = @transform_0, window_bounds = array<i64: 12, 2520>}, {pipeline_mode = #tpu.pipeline_mode<synchronous>, transform_indices = @transform_1, window_bounds = array<i64: 2520, 40>}, {pipeline_mode = #tpu.pipeline_mode<synchronous>, transform_indices = @transform_2, window_bounds = array<i64: 1, 40>}, {transform_indices = @transform_3, window_bounds = array<i64: 12, 40>}]} {
    %c0 = arith.constant 0 : index
    %c0_0 = arith.constant 0 : index
    %0 = vector.load %arg1[%c0, %c0_0] : memref<12x2520xbf16, #tpu.memory_space<vmem>>, vector<12x2520xbf16>
    %c0_1 = arith.constant 0 : index
    %c0_2 = arith.constant 0 : index
    %1 = vector.load %arg2[%c0_1, %c0_2] : memref<2520x40xbf16, #tpu.memory_space<vmem>>, vector<2520x40xbf16>
    %cst = arith.constant dense<0.000000e+00> : vector<12x40xf32>
    %2 = tpu.matmul %0, %1, %cst {dimension_numbers = #tpu.dot_dimension_numbers<[1], [0], [0], [1], [0, 0, 1, 1], [], []>} : vector<12x2520xbf16>, vector<2520x40xbf16>, vector<12x40xf32> -> vector<12x40xf32>
    %c0_3 = arith.constant 0 : index
    %c0_4 = arith.constant 0 : index
    %3 = vector.load %arg3[%c0_3, %c0_4] : memref<1x40xf32, #tpu.memory_space<vmem>>, vector<1x40xf32>
    %4 = vector.broadcast %3 : vector<1x40xf32> to vector<12x40xf32>
    %5 = arith.addf %2, %4 : vector<12x40xf32>
    %cst_5 = arith.constant 0.000000e+00 : f32
    %6 = vector.broadcast %cst_5 : f32 to vector<12x40xf32>
    %7 = arith.cmpf ogt, %5, %6 : vector<12x40xf32>
    %8 = math.exp %5 : vector<12x40xf32>
    %cst_6 = arith.constant 1.000000e+00 : f32
    %9 = vector.broadcast %cst_6 : f32 to vector<12x40xf32>
    %10 = arith.subf %8, %9 : vector<12x40xf32>
    %11 = arith.select %7, %5, %10 : vector<12x40xi1>, vector<12x40xf32>
    %c0_7 = arith.constant 0 : index
    %c0_8 = arith.constant 0 : index
    %12 = vector.load %arg4[%c0_7, %c0_8] : memref<12x40xf32, #tpu.memory_space<vmem>>, vector<12x40xf32>
    tpu.vector_store %arg4[%c0_7, %c0_8], %11 {strides = array<i32>} : memref<12x40xf32, #tpu.memory_space<vmem>>, vector<12x40xf32>,
    return
  }
  func.func @transform_0(%arg0: i32) -> (i32, i32) {
    %c0_i32 = arith.constant 0 : i32
    %c0_i32_0 = arith.constant 0 : i32
    return %arg0, %c0_i32 : i32, i32
  }
  func.func @transform_1(%arg0: i32) -> (i32, i32) {
    %c0_i32 = arith.constant 0 : i32
    %c0_i32_0 = arith.constant 0 : i32
    %c0_i32_1 = arith.constant 0 : i32
    return %c0_i32, %c0_i32_0 : i32, i32
  }
  func.func @transform_2(%arg0: i32) -> (i32, i32) {
    %c0_i32 = arith.constant 0 : i32
    %c0_i32_0 = arith.constant 0 : i32
    %c0_i32_1 = arith.constant 0 : i32
    return %c0_i32, %c0_i32_0 : i32, i32
  }
  func.func @transform_3(%arg0: i32) -> (i32, i32) {
    %c0_i32 = arith.constant 0 : i32
    %c0_i32_0 = arith.constant 0 : i32
    return %arg0, %c0_i32 : i32, i32
  }
}

</mosaic_0001>

<bundles_post_ra>
// kernel: patch_embedding_tsconv.2
= control target key start
LH: loop header
LB: loop body
LE: loop exit
PB: predicated region body
PF: predicated region fallthrough
CT: control target
= control target key end

     0   :  { %vm117_vm0 = vcmask 613376   ;;  %s2778_s16 = smov 123   ;;  %vm142_vm1 = vcmask 1044480   ;;  %vm143_vm2 = vcmask 1045504   ;;  %v2779_v11 = vmov 65535   ;;  %s2780_s11 = smov 118   ;;  %s4258_s0 = inlined_call_operand.vmem [shape: bf16[126,100], index: 0, kind: input, shape index: {}]   ;;  %s4259_s1 = inlined_call_operand.vmem [shape: bf16[75,40], index: 1, kind: input, shape index: {}]   ;;  %s4260_s2 = inlined_call_operand.vmem [shape: f32[1,40], index: 2, kind: input, shape index: {}]   ;;  %s4261_s3 = inlined_call_operand.vmem [shape: bf16[6,126,40], index: 3, kind: output, shape index: {}]  }
   0x1   :  { %v2807_v0 = vld [vmem:[%s4258_s0] sm:$0xff]   ;;  %v2812_v1 = vld [vmem:[%s4258_s0 + $0x8] sm:$0xff]   ;;  %v2818_v2 = vld [vmem:[%s4258_s0 + $0x10] sm:$0xff]   ;;  %v144_v12 = vsel %vm142_vm1, 4294967295, %v2779_v11  ;;  %s2781_s12 = smov 113   ;;  %s2783_s13 = smov 103  }
   0x2   :  { %408 = vrot.lane.b32.xlu0 %v2807_v0, %s2778_s16  ;;  %2420 = vmatprep.mubr.msk.bf16.mxu0 %vm117_vm0, %v2807_v0  ;;  %v2826_v3 = vld [vmem:[%s4258_s0 + $0x18] sm:$0xff]   ;;  %v2832_v4 = vld [vmem:[%s4258_s0 + $0x20] sm:$0xff]   ;;  %v2837_v5 = vld [vmem:[%s4258_s0 + $0x28] sm:$0xff]   ;;  %v145_v15 = vsel %vm143_vm2, %v144_v12, 0  ;;  %vm390_vm5 = vcmask 322560  }
   0x3   :  { %412 = vrot.lane.b32.xlu1 %v2818_v2, %s2778_s16  ;;  %v2843_v6 = vld [vmem:[%s4259_s1] sm:$0xff]   ;;  %v2848_v7 = vld [vmem:[%s4259_s1 + $0x8] sm:$0xff]   ;;  %v2854_v8 = vld [vmem:[%s4258_s0 + $0x30] sm:$0xff]  }
   0x4   :  { %2410 = vmatprep.subr.bf16.mxu0 %v2843_v6  ;;  %v2860_v9 = vld [vmem:[%s4258_s0 + $0x38] sm:$0x7f]   ;;  %2436 = vmatprep.subr.bf16.mxu1 %v2843_v6  ;;  %v2869_v10 = vld [vmem:[%s4259_s1 + $0x10] sm:$0xff]   ;;  %v2584_v14 = vld [vmem:[%s4259_s1 + $0x20] sm:$0x3f]  }
   0x5   :  { %2411 = vmatpush3.bf16.msra.mxu0 %v2843_v6  ;;  %2437 = vmatpush3.bf16.msra.mxu1 %v2843_v6  ;;  %v2880_v13 = vld [vmem:[%s4259_s1 + $0x18] sm:$0xff]   ;;  %v2893_v16 = vand.u32 %v2584_v14, %v145_v15  ;;  %s2782_s1 = smov 108   ;;  %v3044_v57 = vld [vmem:[%s4260_s2] ss:$0 sm:$0xff] }
   0x6   :  { %410 = vrot.lane.b32.xlu0 %v2812_v1, %s2778_s16  ;;  %2412 = vmatprep.subr.bf16.mxu0 %v2848_v7 }
   0x7   :  { %414 = vrot.lane.b32.xlu1 %v2826_v3, %s2778_s16  ;;  %2438 = vmatprep.subr.bf16.mxu1 %v2848_v7 }
   0x9   :  { %2413 = vmatpush3.bf16.msra.mxu0 %v2848_v7  ;;  %2439 = vmatpush3.bf16.msra.mxu1 %v2848_v7 }
   0xa   :  { %416 = vrot.lane.b32.xlu0 %v2832_v4, %s2778_s16  ;;  %2414 = vmatprep.subr.bf16.mxu0 %v2869_v10 }
   0xb   :  { %418 = vrot.lane.b32.xlu1 %v2837_v5, %s2778_s16  ;;  %2440 = vmatprep.subr.bf16.mxu1 %v2869_v10 }
   0xd   :  { %2415 = vmatpush3.bf16.msra.mxu0 %v2869_v10  ;;  %2441 = vmatpush3.bf16.msra.mxu1 %v2869_v10 }
   0xe   :  { %420 = vrot.lane.b32.xlu0 %v2854_v8, %s2778_s16  ;;  %2416 = vmatprep.subr.bf16.mxu0 %v2880_v13 }
   0xf   :  { %422 = vrot.lane.b32.xlu1 %v2860_v9, %s2778_s16  ;;  %2442 = vmatprep.subr.bf16.mxu1 %v2880_v13 }
  0x11   :  { %2417 = vmatpush3.bf16.msra.mxu0 %v2880_v13  ;;  %2443 = vmatpush3.bf16.msra.mxu1 %v2880_v13 }
  0x12   :  { %706 = vrot.lane.b32.xlu0 %v2807_v0, %s2780_s11  ;;  %2418 = vmatprep.subr.bf16.mxu0 %v2893_v16 }
  0x13   :  { %1004 = vrot.lane.b32.xlu1 %v2807_v0, %s2781_s12  ;;  %2444 = vmatprep.subr.bf16.mxu1 %v2893_v16 }
  0x15   :  { %2419 = vmatpush3.bf16.msra.mxu0 %v2893_v16  ;;  %2445 = vmatpush3.bf16.msra.mxu1 %v2893_v16 }
  0x16   :  { %708 = vrot.lane.b32.xlu0 %v2812_v1, %s2780_s11  ;;  %2462 = vmatprep.subr.bf16.mxu0 %v2843_v6 }
  0x17   :  { %1006 = vrot.lane.b32.xlu1 %v2812_v1, %s2781_s12  ;;  %2488 = vmatprep.subr.bf16.mxu1 %v2843_v6 }
  0x18   :  { %2421 = vmatmul.mubr.msk.bf16.vlgmr.msra.gmra.mrb[0].mxu0 %vm117_vm0, %v2812_v1 }
  0x19   :  { %2424 = vmatprep.mubr.msk.bf16.mxu0 %vm117_vm0, %v2818_v2  ;;  %2463 = vmatpush3.bf16.msra.mxu0 %v2843_v6 }
  0x1a   :  { %710 = vrot.lane.b32.xlu0 %v2818_v2, %s2780_s11  ;;  %2464 = vmatprep.subr.bf16.mxu0 %v2848_v7 }
  0x1b   :  { %1008 = vrot.lane.b32.xlu1 %v2818_v2, %s2781_s12 }
  0x1d   :  { %2465 = vmatpush3.bf16.msra.mxu0 %v2848_v7 }
  0x1e   :  { %712 = vrot.lane.b32.xlu0 %v2826_v3, %s2780_s11  ;;  %2466 = vmatprep.subr.bf16.mxu0 %v2869_v10 }
  0x1f   :  { %1010 = vrot.lane.b32.xlu1 %v2826_v3, %s2781_s12 }
  0x20   :  { %2425 = vmatmul.mubr.msk.bf16.gmra.mrb[4].mxu0 %vm117_vm0, %v2826_v3 }
  0x21   :  { %2428 = vmatprep.mubr.msk.bf16.mxu0 %vm117_vm0, %v2832_v4  ;;  %2467 = vmatpush3.bf16.msra.mxu0 %v2869_v10 }
  0x22   :  { %714 = vrot.lane.b32.xlu0 %v2832_v4, %s2780_s11  ;;  %2468 = vmatprep.subr.bf16.mxu0 %v2880_v13 }
  0x23   :  { %1012 = vrot.lane.b32.xlu1 %v2832_v4, %s2781_s12 }
  0x25   :  { %2469 = vmatpush3.bf16.msra.mxu0 %v2880_v13 }
  0x26   :  { %716 = vrot.lane.b32.xlu0 %v2837_v5, %s2780_s11  ;;  %2470 = vmatprep.subr.bf16.mxu0 %v2893_v16 }
  0x27   :  { %1014 = vrot.lane.b32.xlu1 %v2837_v5, %s2781_s12 }
  0x28   :  { %2429 = vmatmul.mubr.msk.bf16.gmra.mrb[8].mxu0 %vm117_vm0, %v2837_v5 }
  0x29   :  { %2432 = vmatprep.mubr.msk.bf16.mxu0 %vm117_vm0, %v2854_v8  ;;  %2471 = vmatpush3.bf16.msra.mxu0 %v2893_v16 }
  0x2a   :  { %718 = vrot.lane.b32.xlu0 %v2854_v8, %s2780_s11  ;;  %2514 = vmatprep.subr.bf16.mxu0 %v2843_v6 }
  0x2b   :  { %1016 = vrot.lane.b32.xlu1 %v2854_v8, %s2781_s12 }
  0x2e   :  { %720 = vrot.lane.b32.xlu0 %v2860_v9, %s2780_s11 }
  0x2f   :  { %1018 = vrot.lane.b32.xlu1 %v2860_v9, %s2781_s12 }
  0x30   :  { %2433 = vmatmul.mubr.msk.bf16.gmra.mrb[12].mxu0 %vm117_vm0, %v2860_v9 }
  0x32   :  { %1302 = vrot.lane.b32.xlu0 %v2807_v0, %s2782_s1 }
  0x33   :  { %1600 = vrot.lane.b32.xlu1 %v2807_v0, %s2783_s13 }
  0x36   :  { %1304 = vrot.lane.b32.xlu0 %v2812_v1, %s2782_s1 }
  0x37   :  { %1602 = vrot.lane.b32.xlu1 %v2812_v1, %s2783_s13 }
  0x3a   :  { %1306 = vrot.lane.b32.xlu0 %v2818_v2, %s2782_s1 }
  0x3b   :  { %1604 = vrot.lane.b32.xlu1 %v2818_v2, %s2783_s13 }
  0x3e   :  { %1308 = vrot.lane.b32.xlu0 %v2826_v3, %s2782_s1 }
  0x3f   :  { %1606 = vrot.lane.b32.xlu1 %v2826_v3, %s2783_s13 }
  0x42   :  { %1310 = vrot.lane.b32.xlu0 %v2832_v4, %s2782_s1 }
  0x43   :  { %1608 = vrot.lane.b32.xlu1 %v2832_v4, %s2783_s13 }
  0x46   :  { %1312 = vrot.lane.b32.xlu0 %v2837_v5, %s2782_s1 }
  0x47   :  { %1610 = vrot.lane.b32.xlu1 %v2837_v5, %s2783_s13 }
  0x4a   :  { %1314 = vrot.lane.b32.xlu0 %v2854_v8, %s2782_s1 }
  0x4b   :  { %1612 = vrot.lane.b32.xlu1 %v2854_v8, %s2783_s13 }
  0x4e   :  { %1316 = vrot.lane.b32.xlu0 %v2860_v9, %s2782_s1 }
  0x4f   :  { %1614 = vrot.lane.b32.xlu1 %v2860_v9, %s2783_s13 }
  0x74   :  { %v409_v17 = vpop.permute.xlu0 %408 }
  0x75   :  { %2446 = vmatprep.mubr.msk.bf16.mxu1 %vm117_vm0, %v409_v17  ;;  %v413_v18 = vpop.permute.xlu1 %412 }
  0x78   :  { %v411_v19 = vpop.permute.xlu0 %410 }
  0x79   :  { %2447 = vmatmul.mubr.msk.bf16.vlgmr.msra.gmra.mrb[0].mxu1 %vm117_vm0, %v411_v19  ;;  %v415_v20 = vpop.permute.xlu1 %414 }
  0x7a   :  { %2489 = vmatpush3.bf16.msra.mxu1 %v2843_v6  ;;  %2450 = vmatprep.mubr.msk.bf16.mxu1 %vm117_vm0, %v413_v18 }
  0x7b   :  { %2490 = vmatprep.subr.bf16.mxu1 %v2848_v7 }
  0x7c   :  { %v417_v21 = vpop.permute.xlu0 %416 }
  0x7d   :  { %v419_v22 = vpop.permute.xlu1 %418 }
  0x7e   :  { %2491 = vmatpush3.bf16.msra.mxu1 %v2848_v7 }
  0x7f   :  { %2492 = vmatprep.subr.bf16.mxu1 %v2869_v10 }
  0x80   :  { %v421_v23 = vpop.permute.xlu0 %420 }
  0x81   :  { %2451 = vmatmul.mubr.msk.bf16.gmra.mrb[4].mxu1 %vm117_vm0, %v415_v20  ;;  %v423_v24 = vpop.permute.xlu1 %422 }
  0x82   :  { %2493 = vmatpush3.bf16.msra.mxu1 %v2869_v10  ;;  %2454 = vmatprep.mubr.msk.bf16.mxu1 %vm117_vm0, %v417_v21 }
  0x83   :  { %2494 = vmatprep.subr.bf16.mxu1 %v2880_v13 }
  0x84   :  { %v707_v25 = vpop.permute.xlu0 %706 }
  0x85   :  { %2472 = vmatprep.mubr.msk.bf16.mxu0 %vm117_vm0, %v707_v25  ;;  %v1005_v26 = vpop.permute.xlu1 %1004 }
  0x86   :  { %2495 = vmatpush3.bf16.msra.mxu1 %v2880_v13 }
  0x87   :  { %2496 = vmatprep.subr.bf16.mxu1 %v2893_v16 }
  0x88   :  { %v709_v27 = vpop.permute.xlu0 %708 }
  0x89   :  { %2455 = vmatmul.mubr.msk.bf16.gmra.mrb[8].mxu1 %vm117_vm0, %v419_v22  ;;  %2473 = vmatmul.mubr.msk.bf16.vlgmr.msra.gmra.mrb[16].mxu0 %vm117_vm0, %v709_v27  ;;  %v1007_v28 = vpop.permute.xlu1 %1006 }
  0x8a   :  { %2458 = vmatprep.mubr.msk.bf16.mxu1 %vm117_vm0, %v421_v23  ;;  %2497 = vmatpush3.bf16.msra.mxu1 %v2893_v16 }
  0x8b   :  { %2515 = vmatpush3.bf16.msra.mxu0 %v2843_v6  ;;  %2540 = vmatprep.subr.bf16.mxu1 %v2843_v6 }
  0x8c   :  { %v711_v29 = vpop.permute.xlu0 %710  ;;  %2516 = vmatprep.subr.bf16.mxu0 %v2848_v7 }
  0x8d   :  { %2476 = vmatprep.mubr.msk.bf16.mxu0 %vm117_vm0, %v711_v29  ;;  %v1009_v30 = vpop.permute.xlu1 %1008 }
  0x8f   :  { %2517 = vmatpush3.bf16.msra.mxu0 %v2848_v7 }
  0x90   :  { %v713_v31 = vpop.permute.xlu0 %712  ;;  %2518 = vmatprep.subr.bf16.mxu0 %v2869_v10 }
  0x91   :  { %2459 = vmatmul.mubr.msk.bf16.gmra.mrb[12].mxu1 %vm117_vm0, %v423_v24  ;;  %2477 = vmatmul.mubr.msk.bf16.gmra.mrb[20].mxu0 %vm117_vm0, %v713_v31  ;;  %v1011_v32 = vpop.permute.xlu1 %1010 }
  0x92   :  { %2498 = vmatprep.mubr.msk.bf16.mxu1 %vm117_vm0, %v1005_v26 }
  0x93   :  { %2519 = vmatpush3.bf16.msra.mxu0 %v2869_v10 }
  0x94   :  { %v715_v33 = vpop.permute.xlu0 %714  ;;  %2520 = vmatprep.subr.bf16.mxu0 %v2880_v13 }
  0x95   :  { %2480 = vmatprep.mubr.msk.bf16.mxu0 %vm117_vm0, %v715_v33  ;;  %v1013_v34 = vpop.permute.xlu1 %1012 }
  0x97   :  { %2521 = vmatpush3.bf16.msra.mxu0 %v2880_v13 }
  0x98   :  { %v717_v35 = vpop.permute.xlu0 %716  ;;  %2522 = vmatprep.subr.bf16.mxu0 %v2893_v16 }
  0x99   :  { %2481 = vmatmul.mubr.msk.bf16.gmra.mrb[24].mxu0 %vm117_vm0, %v717_v35  ;;  %2499 = vmatmul.mubr.msk.bf16.vlgmr.msra.gmra.mrb[16].mxu1 %vm117_vm0, %v1007_v28  ;;  %v1015_v36 = vpop.permute.xlu1 %1014 }
  0x9a   :  { %2541 = vmatpush3.bf16.msra.mxu1 %v2843_v6  ;;  %2502 = vmatprep.mubr.msk.bf16.mxu1 %vm117_vm0, %v1009_v30 }
  0x9b   :  { %2542 = vmatprep.subr.bf16.mxu1 %v2848_v7  ;;  %2523 = vmatpush3.bf16.msra.mxu0 %v2893_v16 }
  0x9c   :  { %v719_v37 = vpop.permute.xlu0 %718 }
  0x9d   :  { %2484 = vmatprep.mubr.msk.bf16.mxu0 %vm117_vm0, %v719_v37  ;;  %v1017_v38 = vpop.permute.xlu1 %1016 }
  0x9e   :  { %2543 = vmatpush3.bf16.msra.mxu1 %v2848_v7 }
  0x9f   :  { %2544 = vmatprep.subr.bf16.mxu1 %v2869_v10 }
  0xa0   :  { %v721_v39 = vpop.permute.xlu0 %720 }
  0xa1   :  { %2485 = vmatmul.mubr.msk.bf16.gmra.mrb[28].mxu0 %vm117_vm0, %v721_v39  ;;  %2503 = vmatmul.mubr.msk.bf16.gmra.mrb[20].mxu1 %vm117_vm0, %v1011_v32  ;;  %v1019_v40 = vpop.permute.xlu1 %1018 }
  0xa2   :  { %2506 = vmatprep.mubr.msk.bf16.mxu1 %vm117_vm0, %v1013_v34  ;;  %2545 = vmatpush3.bf16.msra.mxu1 %v2869_v10 }
  0xa3   :  { %2546 = vmatprep.subr.bf16.mxu1 %v2880_v13 }
  0xa4   :  { %v1303_v41 = vpop.permute.xlu0 %1302 }
  0xa5   :  { %2524 = vmatprep.mubr.msk.bf16.mxu0 %vm117_vm0, %v1303_v41  ;;  %v1601_v42 = vpop.permute.xlu1 %1600 }
  0xa6   :  { %2547 = vmatpush3.bf16.msra.mxu1 %v2880_v13 }
  0xa7   :  { %2548 = vmatprep.subr.bf16.mxu1 %v2893_v16 }
  0xa8   :  { %v1305_v43 = vpop.permute.xlu0 %1304 }
  0xa9   :  { %2507 = vmatmul.mubr.msk.bf16.gmra.mrb[24].mxu1 %vm117_vm0, %v1015_v36  ;;  %2525 = vmatmul.mubr.msk.bf16.vlgmr.msra.gmra.mrb[32].mxu0 %vm117_vm0, %v1305_v43  ;;  %v1603_v44 = vpop.permute.xlu1 %1602 }
  0xaa   :  { %2510 = vmatprep.mubr.msk.bf16.mxu1 %vm117_vm0, %v1017_v38  ;;  %2549 = vmatpush3.bf16.msra.mxu1 %v2893_v16 }
  0xac   :  { %v1307_v45 = vpop.permute.xlu0 %1306 }
  0xad   :  { %2528 = vmatprep.mubr.msk.bf16.mxu0 %vm117_vm0, %v1307_v45  ;;  %v1605_v46 = vpop.permute.xlu1 %1604 }
  0xb0   :  { %v1309_v47 = vpop.permute.xlu0 %1308 }
  0xb1   :  { %2511 = vmatmul.mubr.msk.bf16.gmra.mrb[28].mxu1 %vm117_vm0, %v1019_v40  ;;  %2529 = vmatmul.mubr.msk.bf16.gmra.mrb[36].mxu0 %vm117_vm0, %v1309_v47  ;;  %v1607_v49 = vpop.permute.xlu1 %1606 }
  0xb2   :  { %2550 = vmatprep.mubr.msk.bf16.mxu1 %vm117_vm0, %v1601_v42 }
  0xb4   :  { %v1311_v48 = vpop.permute.xlu0 %1310 }
  0xb5   :  { %2532 = vmatprep.mubr.msk.bf16.mxu0 %vm117_vm0, %v1311_v48  ;;  %v1609_v51 = vpop.permute.xlu1 %1608 }
  0xb8   :  { %v1313_v50 = vpop.permute.xlu0 %1312 }
  0xb9   :  { %2533 = vmatmul.mubr.msk.bf16.gmra.mrb[40].mxu0 %vm117_vm0, %v1313_v50  ;;  %2551 = vmatmul.mubr.msk.bf16.vlgmr.msra.gmra.mrb[32].mxu1 %vm117_vm0, %v1603_v44  ;;  %v1611_v54 = vpop.permute.xlu1 %1610 }
  0xba   :  { %2554 = vmatprep.mubr.msk.bf16.mxu1 %vm117_vm0, %v1605_v46 }
  0xbc   :  { %v1315_v52 = vpop.permute.xlu0 %1314 }
  0xbd   :  { %2536 = vmatprep.mubr.msk.bf16.mxu0 %vm117_vm0, %v1315_v52  ;;  %v1613_v55 = vpop.permute.xlu1 %1612 }
  0xc0   :  { %v1317_v53 = vpop.permute.xlu0 %1316 }
  0xc1   :  { %2537 = vmatmul.mubr.msk.bf16.gmra.mrb[44].mxu0 %vm117_vm0, %v1317_v53  ;;  %2555 = vmatmul.mubr.msk.bf16.gmra.mrb[36].mxu1 %vm117_vm0, %v1607_v49  ;;  %v1615_v56 = vpop.permute.xlu1 %1614 }
  0xc2   :  { %2558 = vmatprep.mubr.msk.bf16.mxu1 %vm117_vm0, %v1609_v51 }
  0xc9   :  { %2559 = vmatmul.mubr.msk.bf16.gmra.mrb[40].mxu1 %vm117_vm0, %v1611_v54 }
  0xca   :  { %2562 = vmatprep.mubr.msk.bf16.mxu1 %vm117_vm0, %v1613_v55 }
  0xd1   :  { %2563 = vmatmul.mubr.msk.bf16.gmra.mrb[44].mxu1 %vm117_vm0, %v1615_v56 }
  0xeb   :  { %v2422_v58 = vpop.f32.mrb[0].mxu0 }
  0xec   :  { %v192_v59 = vadd.f32 %v2422_v58, %v3044_v57  ;;  %v183_v60 = vpop.f32.mrb[1].mxu0 }
  0xed   :  { %v184_v61 = vadd.f32 %v3044_v57, %v183_v60  ;;  %v2423_v62 = vpop.f32.mrb[2].mxu0 }
  0xee   :  { %v266_v63 = vmul.f32 1.442695, %v192_v59  ;;  %v195_v0 = vadd.f32 %v2423_v62, %v3044_v57  ;;  %v186_v1 = vpop.f32.mrb[3].mxu0  ;;  %vm248_vm3 = vcmp.gt.f32.partialorder %v192_v59, 0.0 }
  0xef   :  { %v262_v2 = vmul.f32 1.442695, %v184_v61  ;;  %v187_v3 = vadd.f32 %v3044_v57, %v186_v1  ;;  %vm246_vm4 = vcmp.gt.f32.partialorder %v184_v61, 0.0 }
  0xf0   :  { %2585 = vpow2.f32 %v266_v63  ;;  %v268_v4 = vmul.f32 1.442695, %v195_v0  ;;  %vm249_vm6 = vcmp.gt.f32.partialorder %v195_v0, 0.0 }
  0xf1   :  { %2587 = vpow2.f32 %v262_v2  ;;  %v264_v5 = vmul.f32 1.442695, %v187_v3  ;;  %vm247_vm7 = vcmp.gt.f32.partialorder %v187_v3, 0.0 }
  0xf2   :  { %2589 = vpow2.f32 %v268_v4 }
  0xf3   :  { %2591 = vpow2.f32 %v264_v5  ;;  %v2426_v6 = vpop.f32.mrb[4].mxu0 }
  0xf4   :  { %v3051_v7 = vadd.f32 %v2426_v6, %v3044_v57  ;;  %v199_v8 = vpop.f32.mrb[5].mxu0 }
  0xf5   :  { %v3054_v9 = vadd.f32 %v3044_v57, %v199_v8  ;;  %v2427_v10 = vpop.f32.mrb[6].mxu0 }
  0xf6   :  { %v274_v11 = vmul.f32 1.442695, %v3051_v7  ;;  %v3058_v12 = vadd.f32 %v2427_v10, %v3044_v57  ;;  %v202_v13 = vpop.f32.mrb[7].mxu0  ;;  %vm252_vm8 = vcmp.gt.f32.partialorder %v3051_v7, 0.0 }
  0xf7   :  { %v270_v14 = vmul.f32 1.442695, %v3054_v9  ;;  %v3062_v15 = vadd.f32 %v3044_v57, %v202_v13  ;;  %vm250_vm9 = vcmp.gt.f32.partialorder %v3054_v9, 0.0 }
  0xf8   :  { %2593 = vpow2.f32 %v274_v11  ;;  %v276_v16 = vmul.f32 1.442695, %v3058_v12  ;;  %vm253_vm10 = vcmp.gt.f32.partialorder %v3058_v12, 0.0 }
  0xf9   :  { %2595 = vpow2.f32 %v270_v14  ;;  %v272_v17 = vmul.f32 1.442695, %v3062_v15  ;;  %vm251_vm11 = vcmp.gt.f32.partialorder %v3062_v15, 0.0 }
  0xfa   :  { %v2586_v18 = vpop.eup %2585  ;;  %2597 = vpow2.f32 %v276_v16 }
  0xfb   :  { %v2588_v19 = vpop.eup %2587  ;;  %v1926_v20 = vadd.f32 -1.0, %v2586_v18  ;;  %2599 = vpow2.f32 %v272_v17  ;;  %v2430_v21 = vpop.f32.mrb[8].mxu0 }
  0xfc   :  { %v2590_v22 = vpop.eup %2589  ;;  %v1924_v23 = vadd.f32 -1.0, %v2588_v19  ;;  %v3067_v24 = vadd.f32 %v2430_v21, %v3044_v57  ;;  %v215_v25 = vpop.f32.mrb[9].mxu0 }
  0xfd   :  { %v2592_v26 = vpop.eup %2591  ;;  %v312_v27 = vsel %vm248_vm3, %v192_v59, %v1926_v20  ;;  %v1927_v28 = vadd.f32 -1.0, %v2590_v22  ;;  %v3070_v29 = vadd.f32 %v3044_v57, %v215_v25  ;;  %v2431_v30 = vpop.f32.mrb[10].mxu0 }
  0xfe   :  { %v2238_v31 = vpack.c.bf16 %v312_v27, %v312_v27  ;;  %v310_v32 = vsel %vm246_vm4, %v184_v61, %v1924_v23  ;;  %v1925_v33 = vadd.f32 -1.0, %v2592_v26  ;;  %v218_v34 = vpop.f32.mrb[11].mxu0  ;;  %v282_v37 = vmul.f32 1.442695, %v3067_v24 }
  0xff   :  { %v2236_v35 = vpack.c.bf16 %v310_v32, %v310_v32  ;;  %v313_v36 = vsel %vm249_vm6, %v195_v0, %v1927_v28  ;;  %v278_v40 = vmul.f32 1.442695, %v3070_v29  ;;  %v3080_v41 = vadd.f32 %v2431_v30, %v3044_v57 }
 0x100   :  { %393 = vst.msk [vmem:[%s4261_s3 + $0x8] sm:$0xf] %vm390_vm5, %v2238_v31  ;;  %v2239_v38 = vpack.c.bf16 %v313_v36, %v313_v36  ;;  %v311_v39 = vsel %vm247_vm7, %v187_v3, %v1925_v33  ;;  %2601 = vpow2.f32 %v282_v37  ;;  %v3087_v43 = vadd.f32 %v3044_v57, %v218_v34 }
 0x101   :  { %391 = vst.msk [vmem:[%s4261_s3] sm:$0xf] %vm390_vm5, %v2236_v35  ;;  %v2237_v42 = vpack.c.bf16 %v311_v39, %v311_v39  ;;  %2603 = vpow2.f32 %v278_v40  ;;  %v284_v45 = vmul.f32 1.442695, %v3080_v41  ;;  %vm256_vm12 = vcmp.gt.f32.partialorder %v3067_v24, 0.0 }
 0x102   :  { %v2594_v44 = vpop.eup %2593  ;;  %394 = vst.msk [vmem:[%s4261_s3 + $0xc] sm:$0xf] %vm390_vm5, %v2239_v38  ;;  %v280_v48 = vmul.f32 1.442695, %v3087_v43  ;;  %vm254_vm13 = vcmp.gt.f32.partialorder %v3070_v29, 0.0  ;;  %vm257_vm14 = vcmp.gt.f32.partialorder %v3080_v41, 0.0 }
 0x103   :  { %v2596_v46 = vpop.eup %2595  ;;  %392 = vst.msk [vmem:[%s4261_s3 + $0x4] sm:$0xf] %vm390_vm5, %v2237_v42  ;;  %v1930_v47 = vadd.f32 -1.0, %v2594_v44  ;;  %v2434_v49 = vpop.f32.mrb[12].mxu0  ;;  %2605 = vpow2.f32 %v284_v45  ;;  %vm255_vm15 = vcmp.gt.f32.partialorder %v3087_v43, 0.0  ;;  %vm406_vm4 = vcmask 321536  }
 0x104   :  { %v2598_v50 = vpop.eup %2597  ;;  %v1928_v51 = vadd.f32 -1.0, %v2596_v46  ;;  %v3104_v52 = vadd.f32 %v2434_v49, %v3044_v57  ;;  %v231_v53 = vpop.f32.mrb[13].mxu0  ;;  %2607 = vpow2.f32 %v280_v48 }
 0x105   :  { %v2600_v54 = vpop.eup %2599  ;;  %v316_v55 = vsel %vm252_vm8, %v3051_v7, %v1930_v47  ;;  %v1931_v56 = vadd.f32 -1.0, %v2598_v50  ;;  %v232_v58 = vadd.f32 %v3044_v57, %v231_v53  ;;  %v2435_v59 = vpop.f32.mrb[14].mxu0 }
 0x106   :  { %v2242_v60 = vpack.c.bf16 %v316_v55, %v316_v55  ;;  %v314_v61 = vsel %vm250_vm9, %v3054_v9, %v1928_v51  ;;  %v1929_v62 = vadd.f32 -1.0, %v2600_v54  ;;  %v234_v63 = vpop.f32.mrb[15].mxu0  ;;  %v290_v2 = vmul.f32 1.442695, %v3104_v52 }
 0x107   :  { %v2240_v0 = vpack.c.bf16 %v314_v61, %v314_v61  ;;  %v317_v1 = vsel %vm253_vm10, %v3058_v12, %v1931_v56  ;;  %v286_v5 = vmul.f32 1.442695, %v232_v58  ;;  %v243_v6 = vadd.f32 %v2435_v59, %v3044_v57 }
 0x108   :  { %397 = vst.msk [vmem:[%s4261_s3 + $0x18] sm:$0xf] %vm390_vm5, %v2242_v60  ;;  %v2243_v3 = vpack.c.bf16 %v317_v1, %v317_v1  ;;  %v315_v4 = vsel %vm251_vm11, %v3062_v15, %v1929_v62  ;;  %2609 = vpow2.f32 %v290_v2  ;;  %v235_v8 = vadd.f32 %v3044_v57, %v234_v63 }
 0x109   :  { %395 = vst.msk [vmem:[%s4261_s3 + $0x10] sm:$0xf] %vm390_vm5, %v2240_v0  ;;  %v2241_v7 = vpack.c.bf16 %v315_v4, %v315_v4  ;;  %2611 = vpow2.f32 %v286_v5  ;;  %v292_v9 = vmul.f32 1.442695, %v243_v6  ;;  %vm260_vm0 = vcmp.gt.f32.partialorder %v3104_v52, 0.0 }
 0x10a   :  { %398 = vst.msk [vmem:[%s4261_s3 + $0x1c] sm:$0xf] %vm390_vm5, %v2243_v3  ;;  %v2602_v10 = vpop.eup %2601  ;;  %v288_v11 = vmul.f32 1.442695, %v235_v8  ;;  %vm258_vm1 = vcmp.gt.f32.partialorder %v232_v58, 0.0  ;;  %vm261_vm2 = vcmp.gt.f32.partialorder %v243_v6, 0.0 }
 0x10b   :  { %396 = vst.msk [vmem:[%s4261_s3 + $0x14] sm:$0xf] %vm390_vm5, %v2241_v7  ;;  %v2604_v12 = vpop.eup %2603  ;;  %v1934_v13 = vadd.f32 -1.0, %v2602_v10  ;;  %2613 = vpow2.f32 %v292_v9  ;;  %vm259_vm3 = vcmp.gt.f32.partialorder %v235_v8, 0.0 }
 0x10c   :  { %v1932_v14 = vadd.f32 -1.0, %v2604_v12  ;;  %2615 = vpow2.f32 %v288_v11 }
 0x10d   :  { %v2606_v15 = vpop.eup %2605  ;;  %v320_v16 = vsel %vm256_vm12, %v3067_v24, %v1934_v13 }
 0x10e   :  { %v2608_v17 = vpop.eup %2607  ;;  %v2246_v18 = vpack.c.bf16 %v320_v16, %v320_v16  ;;  %v318_v19 = vsel %vm254_vm13, %v3070_v29, %v1932_v14  ;;  %v1935_v20 = vadd.f32 -1.0, %v2606_v15 }
 0x10f   :  { %v2244_v21 = vpack.c.bf16 %v318_v19, %v318_v19  ;;  %v1933_v22 = vadd.f32 -1.0, %v2608_v17 }
 0x110   :  { %401 = vst.msk [vmem:[%s4261_s3 + $0x28] sm:$0xf] %vm390_vm5, %v2246_v18  ;;  %v321_v23 = vsel %vm257_vm14, %v3080_v41, %v1935_v20 }
 0x111   :  { %399 = vst.msk [vmem:[%s4261_s3 + $0x20] sm:$0xf] %vm390_vm5, %v2244_v21  ;;  %v2247_v24 = vpack.c.bf16 %v321_v23, %v321_v23  ;;  %v319_v25 = vsel %vm255_vm15, %v3087_v43, %v1933_v22 }
 0x112   :  { %v2610_v26 = vpop.eup %2609  ;;  %v2245_v27 = vpack.c.bf16 %v319_v25, %v319_v25 }
 0x113   :  { %v2612_v28 = vpop.eup %2611  ;;  %402 = vst.msk [vmem:[%s4261_s3 + $0x2c] sm:$0xf] %vm390_vm5, %v2247_v24  ;;  %v1938_v29 = vadd.f32 -1.0, %v2610_v26 }
 0x114   :  { %400 = vst.msk [vmem:[%s4261_s3 + $0x24] sm:$0xf] %vm390_vm5, %v2245_v27  ;;  %v1936_v30 = vadd.f32 -1.0, %v2612_v28 }
 0x115   :  { %v2614_v31 = vpop.eup %2613  ;;  %v324_v32 = vsel %vm260_vm0, %v3104_v52, %v1938_v29 }
 0x116   :  { %v2616_v33 = vpop.eup %2615  ;;  %v2250_v34 = vpack.c.bf16 %v324_v32, %v324_v32  ;;  %v322_v35 = vsel %vm258_vm1, %v232_v58, %v1936_v30  ;;  %v1939_v36 = vadd.f32 -1.0, %v2614_v31 }
 0x117   :  { %v2248_v37 = vpack.c.bf16 %v322_v35, %v322_v35  ;;  %v1937_v38 = vadd.f32 -1.0, %v2616_v33 }
 0x118   :  { %405 = vst.msk [vmem:[%s4261_s3 + $0x38] sm:$0xf] %vm390_vm5, %v2250_v34  ;;  %v325_v39 = vsel %vm261_vm2, %v243_v6, %v1939_v36 }
 0x119   :  { %403 = vst.msk [vmem:[%s4261_s3 + $0x30] sm:$0xf] %vm390_vm5, %v2248_v37  ;;  %v2251_v40 = vpack.c.bf16 %v325_v39, %v325_v39  ;;  %v323_v41 = vsel %vm259_vm3, %v235_v8, %v1937_v38 }
 0x11a   :  { %v2249_v42 = vpack.c.bf16 %v323_v41, %v323_v41 }
 0x11b   :  { %407 = vst.msk [vmem:[%s4261_s3 + $0x3c] sm:$0x7] %vm406_vm4, %v2251_v40 }
 0x11c   :  { %404 = vst.msk [vmem:[%s4261_s3 + $0x34] sm:$0xf] %vm390_vm5, %v2249_v42 }
 0x14c   :  { %v2448_v43 = vpop.f32.mrb[0].mxu1 }
 0x14d   :  { %v491_v44 = vadd.f32 %v2448_v43, %v3044_v57  ;;  %v482_v45 = vpop.f32.mrb[1].mxu1 }
 0x14e   :  { %v483_v46 = vadd.f32 %v3044_v57, %v482_v45  ;;  %v2449_v47 = vpop.f32.mrb[2].mxu1 }
 0x14f   :  { %v565_v48 = vmul.f32 1.442695, %v491_v44  ;;  %v494_v49 = vadd.f32 %v2449_v47, %v3044_v57  ;;  %v485_v50 = vpop.f32.mrb[3].mxu1  ;;  %vm547_vm6 = vcmp.gt.f32.partialorder %v491_v44, 0.0 }
 0x150   :  { %v561_v51 = vmul.f32 1.442695, %v483_v46  ;;  %v486_v52 = vadd.f32 %v3044_v57, %v485_v50  ;;  %vm545_vm7 = vcmp.gt.f32.partialorder %v483_v46, 0.0 }
 0x151   :  { %2617 = vpow2.f32 %v565_v48  ;;  %v567_v53 = vmul.f32 1.442695, %v494_v49  ;;  %vm548_vm8 = vcmp.gt.f32.partialorder %v494_v49, 0.0 }
 0x152   :  { %2619 = vpow2.f32 %v561_v51  ;;  %v563_v54 = vmul.f32 1.442695, %v486_v52  ;;  %vm546_vm9 = vcmp.gt.f32.partialorder %v486_v52, 0.0 }
 0x153   :  { %2621 = vpow2.f32 %v567_v53 }
 0x154   :  { %2623 = vpow2.f32 %v563_v54  ;;  %v2452_v55 = vpop.f32.mrb[4].mxu1 }
 0x155   :  { %v3185_v56 = vadd.f32 %v2452_v55, %v3044_v57  ;;  %v498_v58 = vpop.f32.mrb[5].mxu1 }
 0x156   :  { %v3188_v59 = vadd.f32 %v3044_v57, %v498_v58  ;;  %v2453_v60 = vpop.f32.mrb[6].mxu1 }
 0x157   :  { %v573_v61 = vmul.f32 1.442695, %v3185_v56  ;;  %v3192_v62 = vadd.f32 %v2453_v60, %v3044_v57  ;;  %v501_v63 = vpop.f32.mrb[7].mxu1  ;;  %vm551_vm10 = vcmp.gt.f32.partialorder %v3185_v56, 0.0 }
 0x158   :  { %v569_v0 = vmul.f32 1.442695, %v3188_v59  ;;  %v3196_v1 = vadd.f32 %v3044_v57, %v501_v63  ;;  %vm549_vm11 = vcmp.gt.f32.partialorder %v3188_v59, 0.0 }
 0x159   :  { %2625 = vpow2.f32 %v573_v61  ;;  %v575_v2 = vmul.f32 1.442695, %v3192_v62  ;;  %vm552_vm12 = vcmp.gt.f32.partialorder %v3192_v62, 0.0 }
 0x15a   :  { %2627 = vpow2.f32 %v569_v0  ;;  %v571_v3 = vmul.f32 1.442695, %v3196_v1  ;;  %vm550_vm13 = vcmp.gt.f32.partialorder %v3196_v1, 0.0 }
 0x15b   :  { %v2618_v4 = vpop.eup %2617  ;;  %2629 = vpow2.f32 %v575_v2 }
 0x15c   :  { %v2620_v5 = vpop.eup %2619  ;;  %v1966_v6 = vadd.f32 -1.0, %v2618_v4  ;;  %2631 = vpow2.f32 %v571_v3  ;;  %v2456_v7 = vpop.f32.mrb[8].mxu1 }
 0x15d   :  { %v2474_v8 = vpop.f32.mrb[16].mxu0  ;;  %v2622_v9 = vpop.eup %2621  ;;  %v1964_v10 = vadd.f32 -1.0, %v2620_v5  ;;  %v3201_v11 = vadd.f32 %v2456_v7, %v3044_v57 }
 0x15e   :  { %v3204_v12 = vadd.f32 %v2474_v8, %v3044_v57  ;;  %v514_v13 = vpop.f32.mrb[9].mxu1  ;;  %v780_v14 = vpop.f32.mrb[17].mxu0  ;;  %v611_v16 = vsel %vm547_vm6, %v491_v44, %v1966_v6  ;;  %v1967_v17 = vadd.f32 -1.0, %v2622_v9 }
 0x15f   :  { %v2624_v15 = vpop.eup %2623  ;;  %v3207_v18 = vadd.f32 %v3044_v57, %v514_v13  ;;  %v2457_v19 = vpop.f32.mrb[10].mxu1  ;;  %v2254_v21 = vpack.c.bf16 %v611_v16, %v611_v16  ;;  %v609_v22 = vsel %vm545_vm7, %v483_v46, %v1964_v10  ;;  %v3210_v24 = vadd.f32 %v3044_v57, %v780_v14 }
 0x160   :  { %v2475_v20 = vpop.f32.mrb[18].mxu0  ;;  %v1965_v23 = vadd.f32 -1.0, %v2624_v15  ;;  %v517_v25 = vpop.f32.mrb[11].mxu1  ;;  %v2252_v27 = vpack.c.bf16 %v609_v22, %v609_v22  ;;  %v612_v28 = vsel %vm548_vm8, %v494_v49, %v1967_v17  ;;  %v581_v29 = vmul.f32 1.442695, %v3201_v11 }
 0x161   :  { %v783_v26 = vpop.f32.mrb[19].mxu0  ;;  %1998 = vst.msk [vmem:[%s4261_s3 + $0x48] sm:$0xf] %vm390_vm5, %v2254_v21  ;;  %v2255_v30 = vpack.c.bf16 %v612_v28, %v612_v28  ;;  %v863_v32 = vmul.f32 1.442695, %v3204_v12  ;;  %v3231_v37 = vadd.f32 %v2457_v19, %v3044_v57  ;;  %v3234_v38 = vadd.f32 %v2475_v20, %v3044_v57 }
 0x162   :  { %v610_v31 = vsel %vm546_vm9, %v486_v52, %v1965_v23  ;;  %1996 = vst.msk [vmem:[%s4261_s3 + $0x40] sm:$0xf] %vm390_vm5, %v2252_v27  ;;  %2633 = vpow2.f32 %v581_v29  ;;  %v577_v34 = vmul.f32 1.442695, %v3207_v18  ;;  %v859_v36 = vmul.f32 1.442695, %v3210_v24 }
 0x163   :  { %v2253_v33 = vpack.c.bf16 %v610_v31, %v610_v31  ;;  %v2626_v35 = vpop.eup %2625  ;;  %1999 = vst.msk [vmem:[%s4261_s3 + $0x4c] sm:$0xf] %vm390_vm5, %v2255_v30  ;;  %2635 = vpow2.f32 %v863_v32  ;;  %v583_v45 = vmul.f32 1.442695, %v3231_v37  ;;  %v3244_v46 = vadd.f32 %v3044_v57, %v517_v25 }
 0x164   :  { %v2628_v39 = vpop.eup %2627  ;;  %v1970_v40 = vadd.f32 -1.0, %v2626_v35  ;;  %2637 = vpow2.f32 %v577_v34  ;;  %v2460_v41 = vpop.f32.mrb[12].mxu1  ;;  %v865_v52 = vmul.f32 1.442695, %v3234_v38  ;;  %v3251_v53 = vadd.f32 %v3044_v57, %v783_v26 }
 0x165   :  { %1997 = vst.msk [vmem:[%s4261_s3 + $0x44] sm:$0xf] %vm390_vm5, %v2253_v33  ;;  %v2478_v42 = vpop.f32.mrb[20].mxu0  ;;  %v2630_v43 = vpop.eup %2629  ;;  %v1968_v44 = vadd.f32 -1.0, %v2628_v39  ;;  %2639 = vpow2.f32 %v859_v36  ;;  %vm555_vm14 = vcmp.gt.f32.partialorder %v3201_v11, 0.0  ;;  %vm845_vm15 = vcmp.gt.f32.partialorder %v3204_v12, 0.0 }
 0x166   :  { %v530_v47 = vpop.f32.mrb[13].mxu1  ;;  %v796_v48 = vpop.f32.mrb[21].mxu0  ;;  %v615_v50 = vsel %vm551_vm10, %v3185_v56, %v1970_v40  ;;  %v1971_v51 = vadd.f32 -1.0, %v2630_v43  ;;  %2641 = vpow2.f32 %v583_v45  ;;  %v579_v4 = vmul.f32 1.442695, %v3244_v46 }
 0x167   :  { %v2632_v49 = vpop.eup %2631  ;;  %v2461_v54 = vpop.f32.mrb[14].mxu1  ;;  %v2258_v58 = vpack.c.bf16 %v615_v50, %v615_v50  ;;  %v613_v60 = vsel %vm549_vm11, %v3188_v59, %v1968_v44  ;;  %2643 = vpow2.f32 %v865_v52  ;;  %v861_v5 = vmul.f32 1.442695, %v3251_v53 }
 0x168   :  { %v3253_v55 = vpop.f32.mrb[22].mxu0  ;;  %v1969_v61 = vadd.f32 -1.0, %v2632_v49  ;;  %v3258_v63 = vpop.f32.mrb[15].mxu1  ;;  %v2256_v56 = vpack.c.bf16 %v613_v60, %v613_v60  ;;  %v616_v2 = vsel %vm552_vm12, %v3192_v62, %v1971_v51  ;;  %v3281_v6 = vadd.f32 %v2460_v41, %v3044_v57 }
 0x169   :  { %v3260_v0 = vpop.f32.mrb[23].mxu0  ;;  %2002 = vst.msk [vmem:[%s4261_s3 + $0x58] sm:$0xf] %vm390_vm5, %v2258_v58  ;;  %v2259_v59 = vpack.c.bf16 %v616_v2, %v616_v2  ;;  %v3284_v7 = vadd.f32 %v2478_v42, %v3044_v57  ;;  %vm553_vm0 = vcmp.gt.f32.partialorder %v3207_v18, 0.0  ;;  %2645 = vpow2.f32 %v579_v4 }
 0x16a   :  { %v614_v3 = vsel %vm550_vm13, %v3196_v1, %v1969_v61  ;;  %2000 = vst.msk [vmem:[%s4261_s3 + $0x50] sm:$0xf] %vm390_vm5, %v2256_v56  ;;  %v3292_v1 = vadd.f32 %v3044_v57, %v530_v47  ;;  %v3295_v8 = vadd.f32 %v3044_v57, %v796_v48  ;;  %vm843_vm1 = vcmp.gt.f32.partialorder %v3210_v24, 0.0 }
 0x16b   :  { %v2257_v62 = vpack.c.bf16 %v614_v3, %v614_v3  ;;  %2003 = vst.msk [vmem:[%s4261_s3 + $0x5c] sm:$0xf] %vm390_vm5, %v2259_v59  ;;  %vm556_vm2 = vcmp.gt.f32.partialorder %v3231_v37, 0.0  ;;  %2647 = vpow2.f32 %v861_v5  ;;  %v589_v10 = vmul.f32 1.442695, %v3281_v6 }
 0x16c   :  { %v2634_v9 = vpop.eup %2633  ;;  %v3304_v13 = vpop.f32.mrb[24].mxu0  ;;  %v871_v17 = vmul.f32 1.442695, %v3284_v7  ;;  %v585_v19 = vmul.f32 1.442695, %v3292_v1  ;;  %v3311_v20 = vadd.f32 %v2461_v54, %v3044_v57  ;;  %vm846_vm3 = vcmp.gt.f32.partialorder %v3234_v38, 0.0 }
 0x16d   :  { %2001 = vst.msk [vmem:[%s4261_s3 + $0x54] sm:$0xf] %vm390_vm5, %v2257_v62  ;;  %v3306_v14 = vpop.f32.mrb[16].mxu1  ;;  %v2636_v15 = vpop.eup %2635  ;;  %v1974_v16 = vadd.f32 -1.0, %v2634_v9  ;;  %2649 = vpow2.f32 %v589_v10  ;;  %v867_v23 = vmul.f32 1.442695, %v3295_v8  ;;  %v3347_v45 = vadd.f32 %v3253_v55, %v3044_v57 }
 0x16e   :  { %v2638_v21 = vpop.eup %2637  ;;  %v2022_v22 = vadd.f32 -1.0, %v2636_v15  ;;  %v3315_v25 = vpop.f32.mrb[25].mxu0  ;;  %vm554_vm6 = vcmp.gt.f32.partialorder %v3244_v46, 0.0  ;;  %2651 = vpow2.f32 %v871_v17  ;;  %v591_v41 = vmul.f32 1.442695, %v3311_v20 }
 0x16f   :  { %v3317_v26 = vpop.f32.mrb[17].mxu1  ;;  %v2640_v27 = vpop.eup %2639  ;;  %v619_v28 = vsel %vm555_vm14, %v3201_v11, %v1974_v16  ;;  %v1972_v29 = vadd.f32 -1.0, %v2638_v21  ;;  %2653 = vpow2.f32 %v585_v19  ;;  %v3355_v48 = vadd.f32 %v3044_v57, %v3258_v63 }
 0x170   :  { %v3323_v30 = vpop.f32.mrb[26].mxu0  ;;  %v3325_v31 = vpop.f32.mrb[18].mxu1  ;;  %v2262_v32 = vpack.c.bf16 %v619_v28, %v619_v28  ;;  %v909_v33 = vsel %vm845_vm15, %v3204_v12, %v2022_v22  ;;  %v2020_v34 = vadd.f32 -1.0, %v2640_v27  ;;  %2655 = vpow2.f32 %v867_v23 }
 0x171   :  { %v3330_v35 = vpop.f32.mrb[27].mxu0  ;;  %v3332_v36 = vpop.f32.mrb[19].mxu1  ;;  %v2270_v39 = vpack.c.bf16 %v909_v33, %v909_v33  ;;  %v617_v40 = vsel %vm553_vm0, %v3207_v18, %v1972_v29  ;;  %2657 = vpow2.f32 %v591_v41  ;;  %vm844_vm7 = vcmp.gt.f32.partialorder %v3251_v53, 0.0 }
 0x172   :  { %v2642_v11 = vpop.eup %2641  ;;  %2006 = vst.msk [vmem:[%s4261_s3 + $0x68] sm:$0xf] %vm390_vm5, %v2262_v32  ;;  %v2260_v12 = vpack.c.bf16 %v617_v40, %v617_v40  ;;  %v907_v43 = vsel %vm843_vm1, %v3210_v24, %v2020_v34  ;;  %v873_v49 = vmul.f32 1.442695, %v3347_v45  ;;  %v3368_v50 = vadd.f32 %v3044_v57, %v3260_v0 }
 0x173   :  { %v2644_v42 = vpop.eup %2643  ;;  %v1975_v44 = vadd.f32 -1.0, %v2642_v11  ;;  %2054 = vst.msk [vmem:[%s4261_s3 + $0x88] sm:$0xf] %vm390_vm5, %v2270_v39  ;;  %v2268_v18 = vpack.c.bf16 %v907_v43, %v907_v43  ;;  %vm559_vm8 = vcmp.gt.f32.partialorder %v3281_v6, 0.0  ;;  %v587_v58 = vmul.f32 1.442695, %v3355_v48 }
 0x174   :  { %v2023_v47 = vadd.f32 -1.0, %v2644_v42  ;;  %2004 = vst.msk [vmem:[%s4261_s3 + $0x60] sm:$0xf] %vm390_vm5, %v2260_v12  ;;  %v3370_v51 = vpop.f32.mrb[28].mxu0  ;;  %v3372_v52 = vpop.f32.mrb[20].mxu1  ;;  %vm849_vm9 = vcmp.gt.f32.partialorder %v3284_v7, 0.0  ;;  %2659 = vpow2.f32 %v873_v49  ;;  %v3399_v4 = vadd.f32 %v3304_v13, %v3044_v57 }
 0x175   :  { %v620_v24 = vsel %vm556_vm2, %v3231_v37, %v1975_v44  ;;  %v2646_v54 = vpop.eup %2645  ;;  %2052 = vst.msk [vmem:[%s4261_s3 + $0x80] sm:$0xf] %vm390_vm5, %v2268_v18  ;;  %v3383_v60 = vpop.f32.mrb[29].mxu0  ;;  %2661 = vpow2.f32 %v587_v58  ;;  %v869_v3 = vmul.f32 1.442695, %v3368_v50  ;;  %vm557_vm10 = vcmp.gt.f32.partialorder %v3292_v1, 0.0 }
 0x176   :  { %v2263_v55 = vpack.c.bf16 %v620_v24, %v620_v24  ;;  %v910_v37 = vsel %vm846_vm3, %v3234_v38, %v2023_v47  ;;  %v3385_v61 = vpop.f32.mrb[21].mxu1  ;;  %v2648_v63 = vpop.eup %2647  ;;  %v1973_v56 = vadd.f32 -1.0, %v2646_v54  ;;  %vm847_vm11 = vcmp.gt.f32.partialorder %v3295_v8, 0.0 }
 0x177   :  { %v2271_v0 = vpack.c.bf16 %v910_v37, %v910_v37  ;;  %v3388_v2 = vpop.f32.mrb[30].mxu0  ;;  %v3390_v59 = vpop.f32.mrb[22].mxu1  ;;  %v2021_v38 = vadd.f32 -1.0, %v2648_v63  ;;  %v3416_v13 = vadd.f32 %v3306_v14, %v3044_v57  ;;  %2663 = vpow2.f32 %v869_v3 }
 0x178   :  { %2007 = vst.msk [vmem:[%s4261_s3 + $0x6c] sm:$0xf] %vm390_vm5, %v2263_v55  ;;  %v3401_v62 = vpop.f32.mrb[31].mxu0  ;;  %v3403_v5 = vpop.f32.mrb[23].mxu1  ;;  %v618_v10 = vsel %vm554_vm6, %v3244_v46, %v1973_v56  ;;  %v879_v46 = vmul.f32 1.442695, %v3399_v4  ;;  %v3424_v27 = vadd.f32 %v3044_v57, %v3315_v25  ;;  %v3436_v32 = vadd.f32 %v3044_v57, %v3317_v26 }
 0x179   :  { %v2650_v9 = vpop.eup %2649  ;;  %2055 = vst.msk [vmem:[%s4261_s3 + $0x8c] sm:$0xf] %vm390_vm5, %v2271_v0  ;;  %v2261_v16 = vpack.c.bf16 %v618_v10, %v618_v10  ;;  %v908_v17 = vsel %vm844_vm7, %v3251_v53, %v2021_v38  ;;  %v1161_v29 = vmul.f32 1.442695, %v3416_v13  ;;  %vm560_vm12 = vcmp.gt.f32.partialorder %v3311_v20, 0.0 }
 0x17a   :  { %v2652_v15 = vpop.eup %2651  ;;  %v1978_v19 = vadd.f32 -1.0, %v2650_v9  ;;  %v2269_v22 = vpack.c.bf16 %v908_v17, %v908_v17  ;;  %2665 = vpow2.f32 %v879_v46  ;;  %vm850_vm13 = vcmp.gt.f32.partialorder %v3347_v45, 0.0 }
 0x17b   :  { %v2654_v21 = vpop.eup %2653  ;;  %v2026_v23 = vadd.f32 -1.0, %v2652_v15  ;;  %2005 = vst.msk [vmem:[%s4261_s3 + $0x64] sm:$0xf] %vm390_vm5, %v2261_v16  ;;  %2667 = vpow2.f32 %v1161_v29  ;;  %v1157_v24 = vmul.f32 1.442695, %v3436_v32  ;;  %v3492_v58 = vadd.f32 %v3325_v31, %v3044_v57 }
 0x17c   :  { %v2656_v28 = vpop.eup %2655  ;;  %v623_v53 = vsel %vm559_vm8, %v3281_v6, %v1978_v19  ;;  %v1976_v14 = vadd.f32 -1.0, %v2654_v21  ;;  %2053 = vst.msk [vmem:[%s4261_s3 + $0x84] sm:$0xf] %vm390_vm5, %v2269_v22  ;;  %v3445_v6 = vpop.f32.mrb[24].mxu1  ;;  %vm558_vm14 = vcmp.gt.f32.partialorder %v3355_v48, 0.0  ;;  %vm848_vm15 = vcmp.gt.f32.partialorder %v3368_v50, 0.0 }
 0x17d   :  { %v2266_v25 = vpack.c.bf16 %v623_v53, %v623_v53  ;;  %v913_v33 = vsel %vm849_vm9, %v3284_v7, %v2026_v23  ;;  %v2024_v34 = vadd.f32 -1.0, %v2656_v28  ;;  %v3447_v11 = vpop.f32.mrb[32].mxu0  ;;  %v2658_v39 = vpop.eup %2657  ;;  %v1163_v38 = vmul.f32 1.442695, %v3492_v58 }
 0x17e   :  { %v2274_v40 = vpack.c.bf16 %v913_v33, %v913_v33  ;;  %v621_v26 = vsel %vm557_vm10, %v3292_v1, %v1976_v14  ;;  %v3453_v41 = vpop.f32.mrb[25].mxu1  ;;  %v3455_v42 = vpop.f32.mrb[33].mxu0  ;;  %v1979_v43 = vadd.f32 -1.0, %v2658_v39  ;;  %v875_v1 = vmul.f32 1.442695, %v3424_v27 }
 0x17f   :  { %2010 = vst.msk [vmem:[%s4261_s3 + $0x78] sm:$0xf] %vm390_vm5, %v2266_v25  ;;  %v2264_v7 = vpack.c.bf16 %v621_v26, %v621_v26  ;;  %v911_v12 = vsel %vm847_vm11, %v3295_v8, %v2024_v34  ;;  %v3465_v44 = vpop.f32.mrb[26].mxu1  ;;  %v3467_v18 = vpop.f32.mrb[34].mxu0  ;;  %v3477_v8 = vadd.f32 %v3323_v30, %v3044_v57  ;;  %v3496_v30 = vadd.f32 %v3044_v57, %v3330_v35 }
 0x180   :  { %2058 = vst.msk [vmem:[%s4261_s3 + $0x98] sm:$0xf] %vm390_vm5, %v2274_v40  ;;  %v2272_v47 = vpack.c.bf16 %v911_v12, %v911_v12  ;;  %v3479_v49 = vpop.f32.mrb[27].mxu1  ;;  %v3481_v54 = vpop.f32.mrb[35].mxu0  ;;  %v624_v37 = vsel %vm560_vm12, %v3311_v20, %v1979_v43  ;;  %2669 = vpow2.f32 %v875_v1  ;;  %vm853_vm0 = vcmp.gt.f32.partialorder %v3399_v4, 0.0 }
 0x181   :  { %v2660_v55 = vpop.eup %2659  ;;  %2008 = vst.msk [vmem:[%s4261_s3 + $0x70] sm:$0xf] %vm390_vm5, %v2264_v7  ;;  %v2267_v0 = vpack.c.bf16 %v624_v37, %v624_v37  ;;  %2671 = vpow2.f32 %v1157_v24  ;;  %v881_v31 = vmul.f32 1.442695, %v3477_v8  ;;  %v877_v9 = vmul.f32 1.442695, %v3496_v30 }
 0x182   :  { %v2662_v63 = vpop.eup %2661  ;;  %2056 = vst.msk [vmem:[%s4261_s3 + $0x90] sm:$0xf] %vm390_vm5, %v2272_v47  ;;  %v2027_v56 = vadd.f32 -1.0, %v2660_v55  ;;  %v3517_v10 = vadd.f32 %v3044_v57, %v3332_v36  ;;  %vm1143_vm1 = vcmp.gt.f32.partialorder %v3416_v13, 0.0  ;;  %v3539_v28 = vadd.f32 %v3370_v51, %v3044_v57 }
 0x183   :  { %v1977_v20 = vadd.f32 -1.0, %v2662_v63  ;;  %v2664_v35 = vpop.eup %2663  ;;  %2011 = vst.msk [vmem:[%s4261_s3 + $0x7c] sm:$0x7] %vm406_vm4, %v2267_v0  ;;  %2673 = vpow2.f32 %v881_v31  ;;  %v3543_v53 = vadd.f32 %v3372_v52, %v3044_v57  ;;  %v3555_v51 = vadd.f32 %v3044_v57, %v3383_v60 }
 0x184   :  { %v914_v3 = vsel %vm850_vm13, %v3347_v45, %v2027_v56  ;;  %v2025_v17 = vadd.f32 -1.0, %v2664_v35  ;;  %v3520_v19 = vpop.f32.mrb[28].mxu1  ;;  %v3522_v21 = vpop.f32.mrb[36].mxu0  ;;  %2675 = vpow2.f32 %v1163_v38  ;;  %v1159_v45 = vmul.f32 1.442695, %v3517_v10 }
 0x185   :  { %v2275_v15 = vpack.c.bf16 %v914_v3, %v914_v3  ;;  %v622_v16 = vsel %vm558_vm14, %v3355_v48, %v1977_v20  ;;  %v3526_v23 = vpop.f32.mrb[29].mxu1  ;;  %v3528_v46 = vpop.f32.mrb[37].mxu0  ;;  %2677 = vpow2.f32 %v877_v9  ;;  %vm851_vm2 = vcmp.gt.f32.partialorder %v3424_v27, 0.0 }
 0x186   :  { %v2265_v22 = vpack.c.bf16 %v622_v16, %v622_v16  ;;  %v2666_v36 = vpop.eup %2665  ;;  %v912_v48 = vsel %vm848_vm15, %v3368_v50, %v2025_v17  ;;  %v3545_v14 = vpop.f32.mrb[30].mxu1  ;;  %2679 = vpow2.f32 %v1159_v45  ;;  %vm1141_vm3 = vcmp.gt.f32.partialorder %v3436_v32, 0.0 }
 0x187   :  { %2059 = vst.msk [vmem:[%s4261_s3 + $0x9c] sm:$0xf] %vm390_vm5, %v2275_v15  ;;  %v3547_v29 = vpop.f32.mrb[38].mxu0  ;;  %v2668_v25 = vpop.eup %2667  ;;  %v2273_v50 = vpack.c.bf16 %v912_v48, %v912_v48  ;;  %v2030_v33 = vadd.f32 -1.0, %v2666_v36  ;;  %v887_v40 = vmul.f32 1.442695, %v3539_v28  ;;  %v3579_v47 = vadd.f32 %v3044_v57, %v3385_v61 }
 0x188   :  { %2009 = vst.msk [vmem:[%s4261_s3 + $0x74] sm:$0xf] %vm390_vm5, %v2265_v22  ;;  %v3557_v34 = vpop.f32.mrb[31].mxu1  ;;  %v3559_v52 = vpop.f32.mrb[39].mxu0  ;;  %v2078_v39 = vadd.f32 -1.0, %v2668_v25  ;;  %vm854_vm6 = vcmp.gt.f32.partialorder %v3477_v8, 0.0  ;;  %v3583_v37 = vadd.f32 %v3388_v2, %v3044_v57  ;;  %v3606_v20 = vadd.f32 %v3390_v59, %v3044_v57 }
 0x189   :  { %2057 = vst.msk [vmem:[%s4261_s3 + $0x94] sm:$0xf] %vm390_vm5, %v2273_v50  ;;  %v917_v60 = vsel %vm853_vm0, %v3399_v4, %v2030_v33  ;;  %v1169_v26 = vmul.f32 1.442695, %v3543_v53  ;;  %v883_v7 = vmul.f32 1.442695, %v3555_v51  ;;  %2681 = vpow2.f32 %v887_v40 }
 0x18a   :  { %v2670_v12 = vpop.eup %2669  ;;  %v2278_v43 = vpack.c.bf16 %v917_v60, %v917_v60  ;;  %v1207_v1 = vsel %vm1143_vm1, %v3416_v13, %v2078_v39  ;;  %vm1144_vm7 = vcmp.gt.f32.partialorder %v3492_v58, 0.0  ;;  %v1165_v61 = vmul.f32 1.442695, %v3579_v47  ;;  %v3645_v39 = vld [vmem:[%s4260_s2] ss:$0 sm:$0xff] }
 0x18b   :  { %v2672_v24 = vpop.eup %2671  ;;  %v2286_v55 = vpack.c.bf16 %v1207_v1, %v1207_v1  ;;  %v2028_v4 = vadd.f32 -1.0, %v2670_v12  ;;  %2683 = vpow2.f32 %v1169_v26  ;;  %vm852_vm8 = vcmp.gt.f32.partialorder %v3496_v30, 0.0 }
 0x18c   :  { %2062 = vst.msk [vmem:[%s4261_s3 + $0xa8] sm:$0xf] %vm390_vm5, %v2278_v43  ;;  %v2076_v63 = vadd.f32 -1.0, %v2672_v24  ;;  %2685 = vpow2.f32 %v883_v7  ;;  %v3591_v13 = vpop.f32.mrb[40].mxu0  ;;  %v3593_v0 = vpop.f32.mrb[32].mxu1  ;;  %vm1142_vm9 = vcmp.gt.f32.partialorder %v3517_v10, 0.0  ;;  %v3649_v40 = vadd.f32 %v3645_v39, %v3403_v5 }
 0x18d   :  { %2110 = vst.msk [vmem:[%s4261_s3 + $0xc8] sm:$0xf] %vm390_vm5, %v2286_v55  ;;  %v915_v2 = vsel %vm851_vm2, %v3424_v27, %v2028_v4  ;;  %v889_v56 = vmul.f32 1.442695, %v3583_v37  ;;  %v3608_v31 = vpop.f32.mrb[41].mxu0  ;;  %v3610_v38 = vpop.f32.mrb[33].mxu1  ;;  %2687 = vpow2.f32 %v1165_v61  ;;  %v3617_v27 = vadd.f32 %v3044_v57, %v3401_v62 }
 0x18e   :  { %v2674_v35 = vpop.eup %2673  ;;  %v2276_v3 = vpack.c.bf16 %v915_v2, %v915_v2  ;;  %v1205_v9 = vsel %vm1141_vm3, %v3436_v32, %v2076_v63  ;;  %v3619_v15 = vpop.f32.mrb[42].mxu0  ;;  %vm857_vm10 = vcmp.gt.f32.partialorder %v3539_v28, 0.0  ;;  %v1171_v62 = vmul.f32 1.442695, %v3606_v20 }
 0x18f   :  { %v3621_v16 = vpop.f32.mrb[34].mxu1  ;;  %v2676_v59 = vpop.eup %2675  ;;  %v2284_v17 = vpack.c.bf16 %v1205_v9, %v1205_v9  ;;  %v2031_v22 = vadd.f32 -1.0, %v2674_v35  ;;  %2689 = vpow2.f32 %v889_v56  ;;  %v885_v48 = vmul.f32 1.442695, %v3617_v27 }
 0x190   :  { %v3624_v45 = vpop.f32.mrb[43].mxu0  ;;  %v3626_v36 = vpop.f32.mrb[35].mxu1  ;;  %2060 = vst.msk [vmem:[%s4261_s3 + $0xa0] sm:$0xf] %vm390_vm5, %v2276_v3  ;;  %v2079_v57 = vadd.f32 -1.0, %v2676_v59  ;;  %v3653_v60 = vadd.f32 %v3645_v39, %v3445_v6  ;;  %2691 = vpow2.f32 %v1171_v62  ;;  %vm1147_vm11 = vcmp.gt.f32.partialorder %v3543_v53, 0.0 }
 0x191   :  { %v2678_v32 = vpop.eup %2677  ;;  %2108 = vst.msk [vmem:[%s4261_s3 + $0xc0] sm:$0xf] %vm390_vm5, %v2284_v17  ;;  %v918_v50 = vsel %vm854_vm6, %v3477_v8, %v2031_v22  ;;  %2693 = vpow2.f32 %v885_v48  ;;  %vm855_vm12 = vcmp.gt.f32.partialorder %v3555_v51, 0.0  ;;  %v1167_v1 = vmul.f32 1.442695, %v3649_v40 }
 0x192   :  { %v2680_v25 = vpop.eup %2679  ;;  %v2029_v33 = vadd.f32 -1.0, %v2678_v32  ;;  %v2279_v26 = vpack.c.bf16 %v918_v50, %v918_v50  ;;  %v1208_v7 = vsel %vm1144_vm7, %v3492_v58, %v2079_v57  ;;  %v1177_v61 = vmul.f32 1.442695, %v3653_v60 }
 0x193   :  { %v2077_v8 = vadd.f32 -1.0, %v2680_v25  ;;  %v2287_v12 = vpack.c.bf16 %v1208_v7, %v1208_v7  ;;  %v2682_v5 = vpop.eup %2681  ;;  %vm1145_vm13 = vcmp.gt.f32.partialorder %v3579_v47, 0.0  ;;  %2695 = vpow2.f32 %v1167_v1 }
 0x194   :  { %v916_v43 = vsel %vm852_vm8, %v3496_v30, %v2029_v33  ;;  %2063 = vst.msk [vmem:[%s4261_s3 + $0xac] sm:$0xf] %vm390_vm5, %v2279_v26  ;;  %v3671_v24 = vpop.f32.mrb[44].mxu0  ;;  %v3673_v30 = vpop.f32.mrb[36].mxu1  ;;  %v2034_v63 = vadd.f32 -1.0, %v2682_v5  ;;  %v3695_v9 = vadd.f32 %v3645_v39, %v3453_v41  ;;  %2697 = vpow2.f32 %v1177_v61 }
 0x195   :  { %v2277_v6 = vpack.c.bf16 %v916_v43, %v916_v43  ;;  %v1206_v58 = vsel %vm1142_vm9, %v3517_v10, %v2077_v8  ;;  %v2684_v55 = vpop.eup %2683  ;;  %2111 = vst.msk [vmem:[%s4261_s3 + $0xcc] sm:$0xf] %vm390_vm5, %v2287_v12  ;;  %v3682_v10 = vadd.f32 %v3645_v39, %v3447_v11  ;;  %v3684_v2 = vpop.f32.mrb[45].mxu0  ;;  %v3710_v32 = vadd.f32 %v3645_v39, %v3455_v42 }
 0x196   :  { %v2285_v4 = vpack.c.bf16 %v1206_v58, %v1206_v58  ;;  %v3686_v56 = vpop.f32.mrb[37].mxu1  ;;  %v2686_v35 = vpop.eup %2685  ;;  %v2082_v3 = vadd.f32 -1.0, %v2684_v55  ;;  %v921_v17 = vsel %vm857_vm10, %v3539_v28, %v2034_v63  ;;  %vm858_vm14 = vcmp.gt.f32.partialorder %v3583_v37, 0.0 }
 0x197   :  { %2061 = vst.msk [vmem:[%s4261_s3 + $0xa4] sm:$0xf] %vm390_vm5, %v2277_v6  ;;  %v3697_v11 = vpop.f32.mrb[46].mxu0  ;;  %v3699_v59 = vpop.f32.mrb[38].mxu1  ;;  %v2032_v22 = vadd.f32 -1.0, %v2686_v35  ;;  %v2282_v48 = vpack.c.bf16 %v921_v17, %v921_v17  ;;  %vm1148_vm15 = vcmp.gt.f32.partialorder %v3606_v20, 0.0  ;;  %v3740_v43 = vadd.f32 %v3645_v39, %v3465_v44 }
 0x198   :  { %2109 = vst.msk [vmem:[%s4261_s3 + $0xc4] sm:$0xf] %vm390_vm5, %v2285_v4  ;;  %v3712_v41 = vpop.f32.mrb[47].mxu0  ;;  %v3714_v57 = vpop.f32.mrb[39].mxu1  ;;  %v1211_v25 = vsel %vm1147_vm11, %v3543_v53, %v2082_v3  ;;  %v1459_v28 = vmul.f32 1.442695, %v3682_v10  ;;  %v3755_v1 = vadd.f32 %v3645_v39, %v3479_v49  ;;  %v3780_v17 = vadd.f32 %v3645_v39, %v3481_v54 }
 0x199   :  { %v2688_v62 = vpop.eup %2687  ;;  %v2290_v33 = vpack.c.bf16 %v1211_v25, %v1211_v25  ;;  %v919_v42 = vsel %vm855_vm12, %v3555_v51, %v2032_v22  ;;  %v1173_v7 = vmul.f32 1.442695, %v3695_v9  ;;  %2066 = vst.msk [vmem:[%s4261_s3 + $0xb8] sm:$0xf] %vm390_vm5, %v2282_v48  ;;  %v1455_v12 = vmul.f32 1.442695, %v3710_v32 }
 0x19a   :  { %v2690_v50 = vpop.eup %2689  ;;  %v2080_v26 = vadd.f32 -1.0, %v2688_v62  ;;  %v2280_v8 = vpack.c.bf16 %v919_v42, %v919_v42  ;;  %2699 = vpow2.f32 %v1459_v28  ;;  %vm856_vm0 = vcmp.gt.f32.partialorder %v3617_v27, 0.0 }
 0x19b   :  { %v2035_v53 = vadd.f32 -1.0, %v2690_v50  ;;  %2114 = vst.msk [vmem:[%s4261_s3 + $0xd8] sm:$0xf] %vm390_vm5, %v2290_v33  ;;  %2701 = vpow2.f32 %v1173_v7  ;;  %v2692_v5 = vpop.eup %2691  ;;  %vm1146_vm1 = vcmp.gt.f32.partialorder %v3649_v40, 0.0  ;;  %v1179_v49 = vmul.f32 1.442695, %v3740_v43 }
 0x19c   :  { %v1209_v51 = vsel %vm1145_vm13, %v3579_v47, %v2080_v26  ;;  %2064 = vst.msk [vmem:[%s4261_s3 + $0xb0] sm:$0xf] %vm390_vm5, %v2280_v8  ;;  %v3751_v47 = vadd.f32 %v3645_v39, %v3467_v18  ;;  %v3757_v44 = vpop.f32.mrb[40].mxu1  ;;  %v2694_v55 = vpop.eup %2693  ;;  %v2083_v63 = vadd.f32 -1.0, %v2692_v5  ;;  %2703 = vpow2.f32 %v1455_v12 }
 0x19d   :  { %v2288_v6 = vpack.c.bf16 %v1209_v51, %v1209_v51  ;;  %v922_v58 = vsel %vm858_vm14, %v3583_v37, %v2035_v53  ;;  %v3760_v61 = vpop.f32.mrb[41].mxu1  ;;  %v2033_v18 = vadd.f32 -1.0, %v2694_v55  ;;  %vm1151_vm2 = vcmp.gt.f32.partialorder %v3653_v60, 0.0  ;;  %v2696_v62 = vpop.eup %2695 }
 0x19e   :  { %v2283_v4 = vpack.c.bf16 %v922_v58, %v922_v58  ;;  %v1461_v37 = vmul.f32 1.442695, %v3751_v47  ;;  %v1212_v35 = vsel %vm1148_vm15, %v3606_v20, %v2083_v63  ;;  %v1175_v3 = vmul.f32 1.442695, %v3755_v1  ;;  %v3782_v22 = vpop.f32.mrb[42].mxu1  ;;  %v2698_v50 = vpop.eup %2697 }
 0x19f   :  { %2112 = vst.msk [vmem:[%s4261_s3 + $0xd0] sm:$0xf] %vm390_vm5, %v2288_v6  ;;  %v2291_v48 = vpack.c.bf16 %v1212_v35, %v1212_v35  ;;  %v920_v25 = vsel %vm856_vm0, %v3617_v27, %v2033_v18  ;;  %2705 = vpow2.f32 %v1179_v49  ;;  %v3789_v20 = vadd.f32 %v3645_v39, %v3520_v19  ;;  %v3791_v28 = vpop.f32.mrb[43].mxu1 }
 0x1a0   :  { %2067 = vst.msk [vmem:[%s4261_s3 + $0xbc] sm:$0x7] %vm406_vm4, %v2283_v4  ;;  %v2281_v33 = vpack.c.bf16 %v920_v25, %v920_v25  ;;  %v2081_v42 = vadd.f32 -1.0, %v2696_v62  ;;  %vm1441_vm3 = vcmp.gt.f32.partialorder %v3682_v10, 0.0  ;;  %2707 = vpow2.f32 %v1461_v37 }
 0x1a1   :  { %2115 = vst.msk [vmem:[%s4261_s3 + $0xdc] sm:$0xf] %vm390_vm5, %v2291_v48  ;;  %v2086_v54 = vadd.f32 -1.0, %v2698_v50  ;;  %vm1149_vm6 = vcmp.gt.f32.partialorder %v3695_v9, 0.0  ;;  %2709 = vpow2.f32 %v1175_v3  ;;  %v1457_v19 = vmul.f32 1.442695, %v3780_v17 }
 0x1a2   :  { %2065 = vst.msk [vmem:[%s4261_s3 + $0xb4] sm:$0xf] %vm390_vm5, %v2281_v33  ;;  %v1210_v27 = vsel %vm1146_vm1, %v3649_v40, %v2081_v42  ;;  %v1185_v26 = vmul.f32 1.442695, %v3789_v20  ;;  %v3810_v7 = vadd.f32 %v3645_v39, %v3522_v21  ;;  %v3814_v8 = vadd.f32 %v3645_v39, %v3526_v23 }
 0x1a3   :  { %v2289_v51 = vpack.c.bf16 %v1210_v27, %v1210_v27  ;;  %v1215_v12 = vsel %vm1151_vm2, %v3653_v60, %v2086_v54  ;;  %2711 = vpow2.f32 %v1457_v19  ;;  %v3821_v40 = vadd.f32 %v3645_v39, %v3528_v46 }
 0x1a4   :  { %v2700_v53 = vpop.eup %2699  ;;  %v3823_v5 = vpop.f32.mrb[44].mxu1  ;;  %v2294_v21 = vpack.c.bf16 %v1215_v12, %v1215_v12  ;;  %vm1439_vm7 = vcmp.gt.f32.partialorder %v3710_v32, 0.0  ;;  %2713 = vpow2.f32 %v1185_v26  ;;  %vm1152_vm8 = vcmp.gt.f32.partialorder %v3740_v43, 0.0 }
 0x1a5   :  { %v2702_v6 = vpop.eup %2701  ;;  %v2134_v58 = vadd.f32 -1.0, %v2700_v53  ;;  %v3826_v23 = vpop.f32.mrb[45].mxu1  ;;  %2113 = vst.msk [vmem:[%s4261_s3 + $0xd4] sm:$0xf] %vm390_vm5, %v2289_v51  ;;  %v1467_v46 = vmul.f32 1.442695, %v3810_v7  ;;  %v3846_v49 = vadd.f32 %v3645_v39, %v3545_v14  ;;  %v3870_v33 = vadd.f32 %v3645_v39, %v3557_v34 }
 0x1a6   :  { %v2084_v60 = vadd.f32 -1.0, %v2702_v6  ;;  %v1181_v55 = vmul.f32 1.442695, %v3814_v8  ;;  %v2704_v4 = vpop.eup %2703  ;;  %2118 = vst.msk [vmem:[%s4261_s3 + $0xe8] sm:$0xf] %vm390_vm5, %v2294_v21  ;;  %vm1442_vm9 = vcmp.gt.f32.partialorder %v3751_v47, 0.0 }
 0x1a7   :  { %v1505_v63 = vsel %vm1441_vm3, %v3682_v10, %v2134_v58  ;;  %v1463_v18 = vmul.f32 1.442695, %v3821_v40  ;;  %v3848_v37 = vpop.f32.mrb[46].mxu1  ;;  %v2132_v62 = vadd.f32 -1.0, %v2704_v4  ;;  %2715 = vpow2.f32 %v1467_v46 }
 0x1a8   :  { %v2302_v35 = vpack.c.bf16 %v1505_v63, %v1505_v63  ;;  %v1213_v3 = vsel %vm1149_vm6, %v3695_v9, %v2084_v60  ;;  %v3853_v48 = vpop.f32.mrb[47].mxu1  ;;  %vm1150_vm10 = vcmp.gt.f32.partialorder %v3755_v1, 0.0  ;;  %2717 = vpow2.f32 %v1181_v55 }
 0x1a9   :  { %v2292_v10 = vpack.c.bf16 %v1213_v3, %v1213_v3  ;;  %v1187_v25 = vmul.f32 1.442695, %v3846_v49  ;;  %v2706_v50 = vpop.eup %2705  ;;  %v1503_v14 = vsel %vm1439_vm7, %v3710_v32, %v2132_v62  ;;  %2719 = vpow2.f32 %v1463_v18 }
 0x1aa   :  { %2166 = vst.msk [vmem:[%s4261_s3 + $0x108] sm:$0xf] %vm390_vm5, %v2302_v35  ;;  %v3866_v9 = vadd.f32 %v3645_v39, %v3547_v29  ;;  %v2708_v42 = vpop.eup %2707  ;;  %v2300_v54 = vpack.c.bf16 %v1503_v14, %v1503_v14  ;;  %v2087_v19 = vadd.f32 -1.0, %v2706_v50  ;;  %v3878_v32 = vadd.f32 %v3645_v39, %v3559_v52 }
 0x1ab   :  { %2116 = vst.msk [vmem:[%s4261_s3 + $0xe0] sm:$0xf] %vm390_vm5, %v2292_v10  ;;  %2721 = vpow2.f32 %v1187_v25  ;;  %v2710_v27 = vpop.eup %2709  ;;  %v2135_v29 = vadd.f32 -1.0, %v2708_v42  ;;  %vm1440_vm11 = vcmp.gt.f32.partialorder %v3780_v17, 0.0  ;;  %vm1155_vm12 = vcmp.gt.f32.partialorder %v3789_v20, 0.0 }
 0x1ac   :  { %v1469_v34 = vmul.f32 1.442695, %v3866_v9  ;;  %2164 = vst.msk [vmem:[%s4261_s3 + $0x100] sm:$0xf] %vm390_vm5, %v2300_v54  ;;  %v1216_v26 = vsel %vm1152_vm8, %v3740_v43, %v2087_v19  ;;  %v2085_v53 = vadd.f32 -1.0, %v2710_v27  ;;  %vm1445_vm13 = vcmp.gt.f32.partialorder %v3810_v7, 0.0 }
 0x1ad   :  { %v1183_v52 = vmul.f32 1.442695, %v3870_v33  ;;  %v2712_v51 = vpop.eup %2711  ;;  %v2295_v12 = vpack.c.bf16 %v1216_v26, %v1216_v26  ;;  %v1506_v6 = vsel %vm1442_vm9, %v3751_v47, %v2135_v29  ;;  %v1465_v21 = vmul.f32 1.442695, %v3878_v32 }
 0x1ae   :  { %2723 = vpow2.f32 %v1469_v34  ;;  %v2714_v58 = vpop.eup %2713  ;;  %v2303_v60 = vpack.c.bf16 %v1506_v6, %v1506_v6  ;;  %v1214_v43 = vsel %vm1150_vm10, %v3755_v1, %v2085_v53  ;;  %v2133_v46 = vadd.f32 -1.0, %v2712_v51 }
 0x1af   :  { %2725 = vpow2.f32 %v1183_v52  ;;  %2119 = vst.msk [vmem:[%s4261_s3 + $0xec] sm:$0xf] %vm390_vm5, %v2295_v12  ;;  %v2293_v55 = vpack.c.bf16 %v1214_v43, %v1214_v43  ;;  %v2090_v4 = vadd.f32 -1.0, %v2714_v58  ;;  %v3905_v47 = vadd.f32 %v3645_v39, %v3591_v13 }
 0x1b0   :  { %2727 = vpow2.f32 %v1465_v21  ;;  %2167 = vst.msk [vmem:[%s4261_s3 + $0x10c] sm:$0xf] %vm390_vm5, %v2303_v60  ;;  %v1504_v1 = vsel %vm1440_vm11, %v3780_v17, %v2133_v46  ;;  %vm1153_vm14 = vcmp.gt.f32.partialorder %v3814_v8, 0.0  ;;  %v3917_v63 = vadd.f32 %v3645_v39, %v3593_v0 }
 0x1b1   :  { %v3921_v18 = vadd.f32 %v3645_v39, %v3608_v31  ;;  %v2716_v13 = vpop.eup %2715  ;;  %2117 = vst.msk [vmem:[%s4261_s3 + $0xe4] sm:$0xf] %vm390_vm5, %v2293_v55  ;;  %v2301_v35 = vpack.c.bf16 %v1504_v1, %v1504_v1  ;;  %v1219_v17 = vsel %vm1155_vm12, %v3789_v20, %v2090_v4  ;;  %vm1443_vm15 = vcmp.gt.f32.partialorder %v3821_v40, 0.0 }
 0x1b2   :  { %v1475_v0 = vmul.f32 1.442695, %v3905_v47  ;;  %v2718_v3 = vpop.eup %2717  ;;  %v2298_v62 = vpack.c.bf16 %v1219_v17, %v1219_v17  ;;  %v2138_v10 = vadd.f32 -1.0, %v2716_v13  ;;  %v1757_v31 = vmul.f32 1.442695, %v3917_v63 }
 0x1b3   :  { %v3935_v25 = vadd.f32 %v3645_v39, %v3610_v38  ;;  %v2720_v50 = vpop.eup %2719  ;;  %2165 = vst.msk [vmem:[%s4261_s3 + $0x104] sm:$0xf] %vm390_vm5, %v2301_v35  ;;  %v2088_v20 = vadd.f32 -1.0, %v2718_v3  ;;  %vm1156_vm0 = vcmp.gt.f32.partialorder %v3846_v49, 0.0  ;;  %v1471_v14 = vmul.f32 1.442695, %v3921_v18 }
 0x1b4   :  { %2729 = vpow2.f32 %v1475_v0  ;;  %2122 = vst.msk [vmem:[%s4261_s3 + $0xf8] sm:$0xf] %vm390_vm5, %v2298_v62  ;;  %v1509_v38 = vsel %vm1445_vm13, %v3810_v7, %v2138_v10  ;;  %v2136_v54 = vadd.f32 -1.0, %v2720_v50  ;;  %vm1446_vm1 = vcmp.gt.f32.partialorder %v3866_v9, 0.0 }
 0x1b5   :  { %v2722_v42 = vpop.eup %2721  ;;  %2731 = vpow2.f32 %v1757_v31  ;;  %v2306_v19 = vpack.c.bf16 %v1509_v38, %v1509_v38  ;;  %v1217_v27 = vsel %vm1153_vm14, %v3814_v8, %v2088_v20  ;;  %v1753_v53 = vmul.f32 1.442695, %v3935_v25 }
 0x1b6   :  { %v2091_v29 = vadd.f32 -1.0, %v2722_v42  ;;  %2733 = vpow2.f32 %v1471_v14  ;;  %v2296_v34 = vpack.c.bf16 %v1217_v27, %v1217_v27  ;;  %v1507_v26 = vsel %vm1443_vm15, %v3821_v40, %v2136_v54 }
 0x1b7   :  { %v3960_v7 = vadd.f32 %v3645_v39, %v3619_v15  ;;  %2170 = vst.msk [vmem:[%s4261_s3 + $0x118] sm:$0xf] %vm390_vm5, %v2306_v19  ;;  %v2304_v8 = vpack.c.bf16 %v1507_v26, %v1507_v26  ;;  %v3971_v40 = vadd.f32 %v3645_v39, %v3621_v16  ;;  %v3975_v12 = vadd.f32 %v3645_v39, %v3624_v45 }
 0x1b8   :  { %v2724_v52 = vpop.eup %2723  ;;  %v1220_v51 = vsel %vm1156_vm0, %v3846_v49, %v2091_v29  ;;  %2120 = vst.msk [vmem:[%s4261_s3 + $0xf0] sm:$0xf] %vm390_vm5, %v2296_v34  ;;  %2735 = vpow2.f32 %v1753_v53  ;;  %vm1444_vm2 = vcmp.gt.f32.partialorder %v3878_v32, 0.0  ;;  %vm1154_vm3 = vcmp.gt.f32.partialorder %v3870_v33, 0.0 }
 0x1b9   :  { %v2726_v15 = vpop.eup %2725  ;;  %v2299_v6 = vpack.c.bf16 %v1220_v51, %v1220_v51  ;;  %v2139_v21 = vadd.f32 -1.0, %v2724_v52  ;;  %2168 = vst.msk [vmem:[%s4261_s3 + $0x110] sm:$0xf] %vm390_vm5, %v2304_v8  ;;  %v1477_v45 = vmul.f32 1.442695, %v3960_v7  ;;  %v4000_v1 = vadd.f32 %v3645_v39, %v3626_v36 }
 0x1ba   :  { %v2728_v58 = vpop.eup %2727  ;;  %v2089_v16 = vadd.f32 -1.0, %v2726_v15  ;;  %v1759_v49 = vmul.f32 1.442695, %v3971_v40  ;;  %v1473_v46 = vmul.f32 1.442695, %v3975_v12  ;;  %vm1449_vm6 = vcmp.gt.f32.partialorder %v3905_v47, 0.0 }
 0x1bb   :  { %2123 = vst.msk [vmem:[%s4261_s3 + $0xfc] sm:$0x7] %vm406_vm4, %v2299_v6  ;;  %v1510_v60 = vsel %vm1446_vm1, %v3866_v9, %v2139_v21  ;;  %v2137_v43 = vadd.f32 -1.0, %v2728_v58  ;;  %2737 = vpow2.f32 %v1477_v45  ;;  %v4005_v9 = vadd.f32 %v3645_v39, %v3671_v24 }
 0x1bc   :  { %v2307_v55 = vpack.c.bf16 %v1510_v60, %v1510_v60  ;;  %v1218_v4 = vsel %vm1154_vm3, %v3870_v33, %v2089_v16  ;;  %2739 = vpow2.f32 %v1759_v49  ;;  %v1755_v36 = vmul.f32 1.442695, %v4000_v1 }
 0x1bd   :  { %v2297_v13 = vpack.c.bf16 %v1218_v4, %v1218_v4  ;;  %v1508_v35 = vsel %vm1444_vm2, %v3878_v32, %v2137_v43  ;;  %2741 = vpow2.f32 %v1473_v46  ;;  %vm1447_vm7 = vcmp.gt.f32.partialorder %v3921_v18, 0.0 }
 0x1be   :  { %v2730_v17 = vpop.eup %2729  ;;  %2171 = vst.msk [vmem:[%s4261_s3 + $0x11c] sm:$0xf] %vm390_vm5, %v2307_v55  ;;  %v2305_v33 = vpack.c.bf16 %v1508_v35, %v1508_v35  ;;  %v1483_v32 = vmul.f32 1.442695, %v4005_v9  ;;  %v4021_v3 = vadd.f32 %v3645_v39, %v3673_v30  ;;  %2743 = vpow2.f32 %v1755_v36 }
 0x1bf   :  { %v2732_v0 = vpop.eup %2731  ;;  %2121 = vst.msk [vmem:[%s4261_s3 + $0xf4] sm:$0xf] %vm390_vm5, %v2297_v13  ;;  %v2142_v24 = vadd.f32 -1.0, %v2730_v17  ;;  %v4029_v31 = vadd.f32 %v3645_v39, %v3684_v2  ;;  %v4033_v50 = vadd.f32 %v3645_v39, %v3686_v56  ;;  %vm1739_vm8 = vcmp.gt.f32.partialorder %v3917_v63, 0.0 }
 0x1c0   :  { %v2734_v62 = vpop.eup %2733  ;;  %2169 = vst.msk [vmem:[%s4261_s3 + $0x114] sm:$0xf] %vm390_vm5, %v2305_v33  ;;  %v2190_v10 = vadd.f32 -1.0, %v2732_v0  ;;  %2745 = vpow2.f32 %v1483_v32  ;;  %vm1737_vm9 = vcmp.gt.f32.partialorder %v3935_v25, 0.0  ;;  %v1765_v38 = vmul.f32 1.442695, %v4021_v3 }
 0x1c1   :  { %v1513_v20 = vsel %vm1449_vm6, %v3905_v47, %v2142_v24  ;;  %v2140_v30 = vadd.f32 -1.0, %v2734_v62  ;;  %vm1450_vm10 = vcmp.gt.f32.partialorder %v3960_v7, 0.0  ;;  %v1479_v47 = vmul.f32 1.442695, %v4029_v31 }
 0x1c2   :  { %v2310_v14 = vpack.c.bf16 %v1513_v20, %v1513_v20  ;;  %v1803_v42 = vsel %vm1739_vm8, %v3917_v63, %v2190_v10  ;;  %v2736_v54 = vpop.eup %2735  ;;  %2747 = vpow2.f32 %v1765_v38  ;;  %v1761_v27 = vmul.f32 1.442695, %v4033_v50 }
 0x1c3   :  { %v2318_v2 = vpack.c.bf16 %v1803_v42, %v1803_v42  ;;  %v1511_v56 = vsel %vm1447_vm7, %v3921_v18, %v2140_v30  ;;  %v2188_v19 = vadd.f32 -1.0, %v2736_v54  ;;  %2749 = vpow2.f32 %v1479_v47 }
 0x1c4   :  { %2174 = vst.msk [vmem:[%s4261_s3 + $0x128] sm:$0xf] %vm390_vm5, %v2310_v14  ;;  %v2308_v63 = vpack.c.bf16 %v1511_v56, %v1511_v56  ;;  %v4056_v18 = vadd.f32 %v3645_v39, %v3697_v11  ;;  %v4060_v29 = vadd.f32 %v3645_v39, %v3699_v59  ;;  %v4064_v34 = vadd.f32 %v3645_v39, %v3712_v41 }
 0x1c5   :  { %2222 = vst.msk [vmem:[%s4261_s3 + $0x148] sm:$0xf] %vm390_vm5, %v2318_v2  ;;  %v2738_v26 = vpop.eup %2737  ;;  %v1801_v53 = vsel %vm1737_vm9, %v3935_v25, %v2188_v19  ;;  %vm1740_vm11 = vcmp.gt.f32.partialorder %v3971_v40, 0.0  ;;  %vm1448_vm12 = vcmp.gt.f32.partialorder %v3975_v12, 0.0  ;;  %2751 = vpow2.f32 %v1761_v27 }
 0x1c6   :  { %2172 = vst.msk [vmem:[%s4261_s3 + $0x120] sm:$0xf] %vm390_vm5, %v2308_v63  ;;  %v2740_v11 = vpop.eup %2739  ;;  %v2316_v59 = vpack.c.bf16 %v1801_v53, %v1801_v53  ;;  %v2143_v52 = vadd.f32 -1.0, %v2738_v26  ;;  %vm1738_vm13 = vcmp.gt.f32.partialorder %v4000_v1, 0.0  ;;  %v1485_v41 = vmul.f32 1.442695, %v4056_v18 }
 0x1c7   :  { %v2742_v8 = vpop.eup %2741  ;;  %v2191_v51 = vadd.f32 -1.0, %v2740_v11  ;;  %v1767_v15 = vmul.f32 1.442695, %v4060_v29  ;;  %v4080_v6 = vadd.f32 %v3645_v39, %v3714_v57  ;;  %v4084_v25 = vadd.f32 %v3645_v39, %v3757_v44 }
 0x1c8   :  { %2220 = vst.msk [vmem:[%s4261_s3 + $0x140] sm:$0xf] %vm390_vm5, %v2316_v59  ;;  %v1514_v21 = vsel %vm1450_vm10, %v3960_v7, %v2143_v52  ;;  %v2141_v58 = vadd.f32 -1.0, %v2742_v8  ;;  %2753 = vpow2.f32 %v1485_v41  ;;  %v1481_v16 = vmul.f32 1.442695, %v4064_v34  ;;  %v2744_v45 = vpop.eup %2743 }
 0x1c9   :  { %v2311_v57 = vpack.c.bf16 %v1514_v21, %v1514_v21  ;;  %v1804_v44 = vsel %vm1740_vm11, %v3971_v40, %v2191_v51  ;;  %vm1453_vm14 = vcmp.gt.f32.partialorder %v4005_v9, 0.0  ;;  %2755 = vpow2.f32 %v1767_v15 }
 0x1ca   :  { %v2746_v49 = vpop.eup %2745  ;;  %v2319_v60 = vpack.c.bf16 %v1804_v44, %v1804_v44  ;;  %v1512_v43 = vsel %vm1448_vm12, %v3975_v12, %v2141_v58  ;;  %v2189_v7 = vadd.f32 -1.0, %v2744_v45  ;;  %2757 = vpow2.f32 %v1481_v16 }
 0x1cb   :  { %2175 = vst.msk [vmem:[%s4261_s3 + $0x12c] sm:$0xf] %vm390_vm5, %v2311_v57  ;;  %v2309_v46 = vpack.c.bf16 %v1512_v43, %v1512_v43  ;;  %v2146_v55 = vadd.f32 -1.0, %v2746_v49  ;;  %vm1743_vm15 = vcmp.gt.f32.partialorder %v4021_v3, 0.0  ;;  %v1763_v40 = vmul.f32 1.442695, %v4080_v6 }
 0x1cc   :  { %2223 = vst.msk [vmem:[%s4261_s3 + $0x14c] sm:$0xf] %vm390_vm5, %v2319_v60  ;;  %v1802_v12 = vsel %vm1738_vm13, %v4000_v1, %v2189_v7  ;;  %v1773_v4 = vmul.f32 1.442695, %v4084_v25  ;;  %v4117_v13 = vadd.f32 %v3645_v39, %v3760_v61  ;;  %v4121_v35 = vadd.f32 %v3645_v39, %v3782_v22  ;;  %v2748_v17 = vpop.eup %2747 }
 0x1cd   :  { %2173 = vst.msk [vmem:[%s4261_s3 + $0x124] sm:$0xf] %vm390_vm5, %v2309_v46  ;;  %v2317_v33 = vpack.c.bf16 %v1802_v12, %v1802_v12  ;;  %v1517_v1 = vsel %vm1453_vm14, %v4005_v9, %v2146_v55  ;;  %2759 = vpow2.f32 %v1763_v40  ;;  %v4132_v61 = vadd.f32 %v3645_v39, %v3791_v28  ;;  %v2750_v36 = vpop.eup %2749 }
 0x1ce   :  { %v2314_v0 = vpack.c.bf16 %v1517_v1, %v1517_v1  ;;  %v2194_v22 = vadd.f32 -1.0, %v2748_v17  ;;  %vm1451_vm0 = vcmp.gt.f32.partialorder %v4029_v31, 0.0  ;;  %2761 = vpow2.f32 %v1773_v4 }
 0x1cf   :  { %v2752_v24 = vpop.eup %2751  ;;  %2221 = vst.msk [vmem:[%s4261_s3 + $0x144] sm:$0xf] %vm390_vm5, %v2317_v33  ;;  %v2144_v32 = vadd.f32 -1.0, %v2750_v36  ;;  %vm1741_vm1 = vcmp.gt.f32.partialorder %v4033_v50, 0.0  ;;  %v1769_v9 = vmul.f32 1.442695, %v4117_v13  ;;  %v4154_v42 = vadd.f32 %v3645_v39, %v3823_v5 }
 0x1d0   :  { %v1775_v28 = vmul.f32 1.442695, %v4121_v35  ;;  %2178 = vst.msk [vmem:[%s4261_s3 + $0x138] sm:$0xf] %vm390_vm5, %v2314_v0  ;;  %v1807_v62 = vsel %vm1743_vm15, %v4021_v3, %v2194_v22  ;;  %v2192_v10 = vadd.f32 -1.0, %v2752_v24  ;;  %vm1454_vm2 = vcmp.gt.f32.partialorder %v4056_v18, 0.0 }
 0x1d1   :  { %v1771_v20 = vmul.f32 1.442695, %v4132_v61  ;;  %v2322_v30 = vpack.c.bf16 %v1807_v62, %v1807_v62  ;;  %v1515_v14 = vsel %vm1451_vm0, %v4029_v31, %v2144_v32  ;;  %2763 = vpow2.f32 %v1769_v9 }
 0x1d2   :  { %v2754_v38 = vpop.eup %2753  ;;  %v2312_v54 = vpack.c.bf16 %v1515_v14, %v1515_v14  ;;  %v1805_v2 = vsel %vm1741_vm1, %v4033_v50, %v2192_v10  ;;  %2765 = vpow2.f32 %v1775_v28  ;;  %v4159_v3 = vadd.f32 %v3645_v39, %v3826_v23 }
 0x1d3   :  { %v2756_v56 = vpop.eup %2755  ;;  %2226 = vst.msk [vmem:[%s4261_s3 + $0x158] sm:$0xf] %vm390_vm5, %v2322_v30  ;;  %v2320_v31 = vpack.c.bf16 %v1805_v2, %v1805_v2  ;;  %v2147_v47 = vadd.f32 -1.0, %v2754_v38  ;;  %vm1744_vm3 = vcmp.gt.f32.partialorder %v4060_v29, 0.0  ;;  %2767 = vpow2.f32 %v1771_v20 }
 0x1d4   :  { %v2758_v5 = vpop.eup %2757  ;;  %2176 = vst.msk [vmem:[%s4261_s3 + $0x130] sm:$0xf] %vm390_vm5, %v2312_v54  ;;  %v2195_v50 = vadd.f32 -1.0, %v2756_v56  ;;  %vm1452_vm6 = vcmp.gt.f32.partialorder %v4064_v34, 0.0  ;;  %v1781_v23 = vmul.f32 1.442695, %v4154_v42  ;;  %v4182_v26 = vadd.f32 %v3645_v39, %v3848_v37 }
 0x1d5   :  { %v1777_v63 = vmul.f32 1.442695, %v4159_v3  ;;  %2224 = vst.msk [vmem:[%s4261_s3 + $0x150] sm:$0xf] %vm390_vm5, %v2320_v31  ;;  %v1518_v19 = vsel %vm1454_vm2, %v4056_v18, %v2147_v47  ;;  %v2145_v27 = vadd.f32 -1.0, %v2758_v5  ;;  %v4186_v53 = vadd.f32 %v3645_v39, %v3853_v48 }
 0x1d6   :  { %v2315_v11 = vpack.c.bf16 %v1518_v19, %v1518_v19  ;;  %v1808_v59 = vsel %vm1744_vm3, %v4060_v29, %v2195_v50  ;;  %2769 = vpow2.f32 %v1781_v23  ;;  %v1783_v39 = vmul.f32 1.442695, %v4182_v26 }
 0x1d7   :  { %v2760_v52 = vpop.eup %2759  ;;  %v2323_v41 = vpack.c.bf16 %v1808_v59, %v1808_v59  ;;  %v1516_v8 = vsel %vm1452_vm6, %v4064_v34, %v2145_v27  ;;  %2771 = vpow2.f32 %v1777_v63  ;;  %vm1742_vm7 = vcmp.gt.f32.partialorder %v4080_v6, 0.0 }
 0x1d8   :  { %v2762_v51 = vpop.eup %2761  ;;  %2179 = vst.msk [vmem:[%s4261_s3 + $0x13c] sm:$0x7] %vm406_vm4, %v2315_v11  ;;  %v2313_v37 = vpack.c.bf16 %v1516_v8, %v1516_v8  ;;  %v2193_v18 = vadd.f32 -1.0, %v2760_v52  ;;  %v1779_v29 = vmul.f32 1.442695, %v4186_v53  ;;  %vm1747_vm8 = vcmp.gt.f32.partialorder %v4084_v25, 0.0 }
 0x1d9   :  { %2227 = vst.msk [vmem:[%s4261_s3 + $0x15c] sm:$0xf] %vm390_vm5, %v2323_v41  ;;  %v2198_v48 = vadd.f32 -1.0, %v2762_v51  ;;  %2773 = vpow2.f32 %v1783_v39  ;;  %vm1745_vm9 = vcmp.gt.f32.partialorder %v4117_v13, 0.0  ;;  %vm1748_vm10 = vcmp.gt.f32.partialorder %v4121_v35, 0.0 }
 0x1da   :  { %2177 = vst.msk [vmem:[%s4261_s3 + $0x134] sm:$0xf] %vm390_vm5, %v2313_v37  ;;  %v1806_v34 = vsel %vm1742_vm7, %v4080_v6, %v2193_v18  ;;  %2775 = vpow2.f32 %v1779_v29  ;;  %vm1746_vm11 = vcmp.gt.f32.partialorder %v4132_v61, 0.0  ;;  %vm1751_vm12 = vcmp.gt.f32.partialorder %v4154_v42, 0.0 }
 0x1db   :  { %v2764_v15 = vpop.eup %2763  ;;  %v2321_v21 = vpack.c.bf16 %v1806_v34, %v1806_v34  ;;  %v1811_v58 = vsel %vm1747_vm8, %v4084_v25, %v2198_v48  ;;  %vm1749_vm13 = vcmp.gt.f32.partialorder %v4159_v3, 0.0  ;;  %vm1752_vm14 = vcmp.gt.f32.partialorder %v4182_v26, 0.0 }
 0x1dc   :  { %v2766_v16 = vpop.eup %2765  ;;  %v2326_v45 = vpack.c.bf16 %v1811_v58, %v1811_v58  ;;  %v2196_v57 = vadd.f32 -1.0, %v2764_v15  ;;  %vm1750_vm15 = vcmp.gt.f32.partialorder %v4186_v53, 0.0 }
 0x1dd   :  { %v2768_v44 = vpop.eup %2767  ;;  %2225 = vst.msk [vmem:[%s4261_s3 + $0x154] sm:$0xf] %vm390_vm5, %v2321_v21  ;;  %v2199_v6 = vadd.f32 -1.0, %v2766_v16 }
 0x1de   :  { %2230 = vst.msk [vmem:[%s4261_s3 + $0x168] sm:$0xf] %vm390_vm5, %v2326_v45  ;;  %v1809_v25 = vsel %vm1745_vm9, %v4117_v13, %v2196_v57  ;;  %v2197_v49 = vadd.f32 -1.0, %v2768_v44 }
 0x1df   :  { %v2324_v60 = vpack.c.bf16 %v1809_v25, %v1809_v25  ;;  %v1812_v43 = vsel %vm1748_vm10, %v4121_v35, %v2199_v6 }
 0x1e0   :  { %v2770_v7 = vpop.eup %2769  ;;  %v2327_v46 = vpack.c.bf16 %v1812_v43, %v1812_v43  ;;  %v1810_v55 = vsel %vm1746_vm11, %v4132_v61, %v2197_v49 }
 0x1e1   :  { %v2772_v40 = vpop.eup %2771  ;;  %2228 = vst.msk [vmem:[%s4261_s3 + $0x160] sm:$0xf] %vm390_vm5, %v2324_v60  ;;  %v2325_v12 = vpack.c.bf16 %v1810_v55, %v1810_v55  ;;  %v2202_v4 = vadd.f32 -1.0, %v2770_v7 }
 0x1e2   :  { %2231 = vst.msk [vmem:[%s4261_s3 + $0x16c] sm:$0xf] %vm390_vm5, %v2327_v46  ;;  %v2200_v13 = vadd.f32 -1.0, %v2772_v40 }
 0x1e3   :  { %2229 = vst.msk [vmem:[%s4261_s3 + $0x164] sm:$0xf] %vm390_vm5, %v2325_v12  ;;  %v1815_v35 = vsel %vm1751_vm12, %v4154_v42, %v2202_v4  ;;  %v2774_v17 = vpop.eup %2773 }
 0x1e4   :  { %v2330_v33 = vpack.c.bf16 %v1815_v35, %v1815_v35  ;;  %v1813_v1 = vsel %vm1749_vm13, %v4159_v3, %v2200_v13  ;;  %v2776_v61 = vpop.eup %2775  ;;  %v2203_v0 = vadd.f32 -1.0, %v2774_v17 }
 0x1e5   :  { %v2328_v36 = vpack.c.bf16 %v1813_v1, %v1813_v1  ;;  %v2201_v22 = vadd.f32 -1.0, %v2776_v61 }
 0x1e6   :  { %2234 = vst.msk [vmem:[%s4261_s3 + $0x178] sm:$0xf] %vm390_vm5, %v2330_v33  ;;  %v1816_v24 = vsel %vm1752_vm14, %v4182_v26, %v2203_v0 }
 0x1e7   :  { %2232 = vst.msk [vmem:[%s4261_s3 + $0x170] sm:$0xf] %vm390_vm5, %v2328_v36  ;;  %v2331_v32 = vpack.c.bf16 %v1816_v24, %v1816_v24  ;;  %v1814_v9 = vsel %vm1750_vm15, %v4186_v53, %v2201_v22 }
 0x1e8   :  { %v2329_v28 = vpack.c.bf16 %v1814_v9, %v1814_v9 }
 0x1e9   :  { %2235 = vst.msk [vmem:[%s4261_s3 + $0x17c] sm:$0x7] %vm406_vm4, %v2331_v32 }
 0x1ea   :  { %2233 = vst.msk [vmem:[%s4261_s3 + $0x174] sm:$0xf] %vm390_vm5, %v2329_v28 }

// kernel: patch_embedding_tsconv.3
= control target key start
LH: loop header
LB: loop body
LE: loop exit
PB: predicated region body
PF: predicated region fallthrough
CT: control target
= control target key end

     0   :  { %vm1401_vm0 = vcmask 719872   ;;  %vm1405_vm1 = vcmask 1043456   ;;  %vm1829_vm2 = vcmask 326656   ;;  %vm1831_vm4 = vcmask 322560   ;;  %s2988_s1 = inlined_call_operand.vmem [shape: bf16[2520,40], index: 1, kind: input, shape index: {}]   ;;  %s2989_s0 = inlined_call_operand.vmem [shape: bf16[12,2520], index: 0, kind: input, shape index: {}]   ;;  %s2990_s2 = inlined_call_operand.vmem [shape: f32[1,40], index: 2, kind: input, shape index: {}]   ;;  %s2991_s3 = inlined_call_operand.vmem [shape: f32[12,40], index: 3, kind: output, shape index: {}]  }
   0x1   :  { %v2218_v0 = vld [vmem:[%s2988_s1 + $0x40] sm:$0xff]   ;;  %v2222_v4 = vld [vmem:[%s2988_s1 + $0x48] sm:$0xff]   ;;  %v2226_v8 = vld [vmem:[%s2988_s1 + $0x50] sm:$0xff]  }
   0x2   :  { %v2219_v1 = vld [vmem:[%s2988_s1 + $0xc0] sm:$0xff]   ;;  %2019 = vmatprep.subr.bf16.mxu0 %v2218_v0  ;;  %v2223_v5 = vld [vmem:[%s2988_s1 + $0xc8] sm:$0xff]   ;;  %v2227_v9 = vld [vmem:[%s2988_s1 + $0xd0] sm:$0xff]  }
   0x3   :  { %v2220_v2 = vld [vmem:[%s2988_s1] sm:$0xff]   ;;  %2041 = vmatprep.subr.bf16.mxu1 %v2219_v1  ;;  %v2224_v6 = vld [vmem:[%s2988_s1 + $0x8] sm:$0xff]   ;;  %v2228_v10 = vld [vmem:[%s2988_s1 + $0x10] sm:$0xff]  }
   0x4   :  { %v2221_v3 = vld [vmem:[%s2988_s1 + $0x80] sm:$0xff]   ;;  %2020 = vmatpush3.bf16.msra.mxu0 %v2220_v2  ;;  %v2225_v7 = vld [vmem:[%s2988_s1 + $0x88] sm:$0xff]   ;;  %v2229_v11 = vld [vmem:[%s2988_s1 + $0x90] sm:$0xff]  }
   0x5   :  { %2042 = vmatpush3.bf16.msra.mxu1 %v2221_v3  ;;  %2021 = vmatprep.subr.bf16.mxu0 %v2222_v4  ;;  %v2230_v12 = vld [vmem:[%s2988_s1 + $0x58] sm:$0xff]   ;;  %v2234_v16 = vld [vmem:[%s2988_s1 + $0x60] sm:$0xff]   ;;  %v2238_v20 = vld [vmem:[%s2988_s1 + $0x68] sm:$0xff]  }
   0x6   :  { %2043 = vmatprep.subr.bf16.mxu1 %v2223_v5  ;;  %v2231_v13 = vld [vmem:[%s2988_s1 + $0xd8] sm:$0xff]   ;;  %v2235_v17 = vld [vmem:[%s2988_s1 + $0xe0] sm:$0xff]   ;;  %v2239_v21 = vld [vmem:[%s2988_s1 + $0xe8] sm:$0xff]  }
   0x7   :  { %v2232_v14 = vld [vmem:[%s2988_s1 + $0x18] sm:$0xff]   ;;  %v2236_v18 = vld [vmem:[%s2988_s1 + $0x20] sm:$0xff]   ;;  %v2240_v22 = vld [vmem:[%s2988_s1 + $0x28] sm:$0xff]  }
   0x8   :  { %2022 = vmatpush3.bf16.msra.mxu0 %v2224_v6  ;;  %v2233_v15 = vld [vmem:[%s2988_s1 + $0x98] sm:$0xff]   ;;  %v2237_v19 = vld [vmem:[%s2988_s1 + $0xa0] sm:$0xff]   ;;  %v2241_v23 = vld [vmem:[%s2988_s1 + $0xa8] sm:$0xff]  }
   0x9   :  { %2044 = vmatpush3.bf16.msra.mxu1 %v2225_v7  ;;  %2023 = vmatprep.subr.bf16.mxu0 %v2226_v8  ;;  %v2242_v24 = vld [vmem:[%s2988_s1 + $0x70] sm:$0xff]   ;;  %v2246_v28 = vld [vmem:[%s2988_s1 + $0x78] sm:$0xff]   ;;  %v2256_v36 = vld [vmem:[%s2988_s1 + $0x140] sm:$0xff]  }
   0xa   :  { %2045 = vmatprep.subr.bf16.mxu1 %v2227_v9  ;;  %v2243_v25 = vld [vmem:[%s2988_s1 + $0xf0] sm:$0xff]   ;;  %v2247_v29 = vld [vmem:[%s2988_s1 + $0xf8] sm:$0xff]   ;;  %v2257_v37 = vld [vmem:[%s2988_s1 + $0x1c0] sm:$0xff]  }
   0xb   :  { %v2244_v26 = vld [vmem:[%s2988_s1 + $0x30] sm:$0xff]   ;;  %v2248_v30 = vld [vmem:[%s2988_s1 + $0x38] sm:$0xff]   ;;  %v2258_v38 = vld [vmem:[%s2988_s1 + $0x100] sm:$0xff]  }
   0xc   :  { %2024 = vmatpush3.bf16.msra.mxu0 %v2228_v10  ;;  %v2245_v27 = vld [vmem:[%s2988_s1 + $0xb0] sm:$0xff]   ;;  %v2249_v31 = vld [vmem:[%s2988_s1 + $0xb8] sm:$0xff]   ;;  %v2259_v39 = vld [vmem:[%s2988_s1 + $0x180] sm:$0xff]  }
   0xd   :  { %2046 = vmatpush3.bf16.msra.mxu1 %v2229_v11  ;;  %2025 = vmatprep.subr.bf16.mxu0 %v2230_v12  ;;  %v2250_v32 = vld [vmem:[%s2989_s0] ss:$80 sps:$4 sm:$0x3f]   ;;  %v2252_v33 = vld [vmem:[%s2989_s0 + $0x4] ss:$80 sps:$4 sm:$0x3f]  }
   0xe   :  { %2047 = vmatprep.subr.bf16.mxu1 %v2231_v13  ;;  %v2253_v34 = vld [vmem:[%s2989_s0 + $0x8] ss:$80 sps:$4 sm:$0x3f]   ;;  %v2255_v35 = vld [vmem:[%s2989_s0 + $0xc] ss:$80 sps:$4 sm:$0x3f]   ;;  %1441 = vmatprep.mubr.bf16.mxu0 %v2252_v33 }
   0xf   :  { %1482 = vmatprep.mubr.bf16.mxu1 %v2255_v35  ;;  %v2260_v40 = vld [vmem:[%s2988_s1 + $0x148] sm:$0xff]   ;;  %v2264_v44 = vld [vmem:[%s2988_s1 + $0x150] sm:$0xff]   ;;  %v2268_v48 = vld [vmem:[%s2988_s1 + $0x158] sm:$0xff]  }
  0x10   :  { %2026 = vmatpush3.bf16.msra.mxu0 %v2232_v14  ;;  %v2261_v41 = vld [vmem:[%s2988_s1 + $0x1c8] sm:$0xff]   ;;  %v2265_v45 = vld [vmem:[%s2988_s1 + $0x1d0] sm:$0xff]   ;;  %v2269_v49 = vld [vmem:[%s2988_s1 + $0x1d8] sm:$0xff]  }
  0x11   :  { %2048 = vmatpush3.bf16.msra.mxu1 %v2233_v15  ;;  %2027 = vmatprep.subr.bf16.mxu0 %v2234_v16  ;;  %v2262_v42 = vld [vmem:[%s2988_s1 + $0x108] sm:$0xff]   ;;  %v2266_v46 = vld [vmem:[%s2988_s1 + $0x110] sm:$0xff]   ;;  %v2270_v50 = vld [vmem:[%s2988_s1 + $0x118] sm:$0xff]  }
  0x12   :  { %2049 = vmatprep.subr.bf16.mxu1 %v2235_v17  ;;  %v2263_v43 = vld [vmem:[%s2988_s1 + $0x188] sm:$0xff]   ;;  %v2267_v47 = vld [vmem:[%s2988_s1 + $0x190] sm:$0xff]   ;;  %v2271_v51 = vld [vmem:[%s2988_s1 + $0x198] sm:$0xff]  }
  0x13   :  { %v2272_v52 = vld [vmem:[%s2988_s1 + $0x160] sm:$0xff]   ;;  %v2276_v56 = vld [vmem:[%s2988_s1 + $0x168] sm:$0xff]   ;;  %v2280_v60 = vld [vmem:[%s2988_s1 + $0x170] sm:$0xff]  }
  0x14   :  { %2028 = vmatpush3.bf16.msra.mxu0 %v2236_v18  ;;  %v2273_v53 = vld [vmem:[%s2988_s1 + $0x1e0] sm:$0xff]   ;;  %v2277_v57 = vld [vmem:[%s2988_s1 + $0x1e8] sm:$0xff]   ;;  %v2281_v61 = vld [vmem:[%s2988_s1 + $0x1f0] sm:$0xff]  }
  0x15   :  { %2050 = vmatpush3.bf16.msra.mxu1 %v2237_v19  ;;  %2029 = vmatprep.subr.bf16.mxu0 %v2238_v20  ;;  %v2274_v54 = vld [vmem:[%s2988_s1 + $0x120] sm:$0xff]   ;;  %v2278_v58 = vld [vmem:[%s2988_s1 + $0x128] sm:$0xff]   ;;  %v2282_v62 = vld [vmem:[%s2988_s1 + $0x130] sm:$0xff]  }
  0x16   :  { %2051 = vmatprep.subr.bf16.mxu1 %v2239_v21  ;;  %v2275_v55 = vld [vmem:[%s2988_s1 + $0x1a0] sm:$0xff]   ;;  %v2279_v59 = vld [vmem:[%s2988_s1 + $0x1a8] sm:$0xff]   ;;  %v2283_v63 = vld [vmem:[%s2988_s1 + $0x1b0] sm:$0xff]  }
  0x17   :  { %v2284_v0 = vld [vmem:[%s2988_s1 + $0x178] sm:$0xff]   ;;  %v2288_v4 = vld [vmem:[%s2989_s0 + $0x10] ss:$80 sps:$4 sm:$0x3f]   ;;  %v2298_v12 = vld [vmem:[%s2988_s1 + $0x248] sm:$0xff]  }
  0x18   :  { %2030 = vmatpush3.bf16.msra.mxu0 %v2240_v22  ;;  %v2285_v1 = vld [vmem:[%s2988_s1 + $0x1f8] sm:$0xff]   ;;  %v2290_v5 = vld [vmem:[%s2989_s0 + $0x14] ss:$80 sps:$4 sm:$0x3f]   ;;  %v2299_v13 = vld [vmem:[%s2988_s1 + $0x2c8] sm:$0xff]  }
  0x19   :  { %2052 = vmatpush3.bf16.msra.mxu1 %v2241_v23  ;;  %2031 = vmatprep.subr.bf16.mxu0 %v2242_v24  ;;  %v2286_v2 = vld [vmem:[%s2988_s1 + $0x138] sm:$0xff]   ;;  %v2294_v8 = vld [vmem:[%s2988_s1 + $0x240] sm:$0xff]   ;;  %v2300_v14 = vld [vmem:[%s2988_s1 + $0x208] sm:$0xff]  }
  0x1a   :  { %2053 = vmatprep.subr.bf16.mxu1 %v2243_v25  ;;  %v2287_v3 = vld [vmem:[%s2988_s1 + $0x1b8] sm:$0xff]   ;;  %v2295_v9 = vld [vmem:[%s2988_s1 + $0x2c0] sm:$0xff]   ;;  %v2301_v15 = vld [vmem:[%s2988_s1 + $0x288] sm:$0xff]  }
  0x1b   :  { %v2291_v6 = vld [vmem:[%s2989_s0 + $0x18] ss:$80 sps:$4 sm:$0x3f]   ;;  %v2293_v7 = vld [vmem:[%s2989_s0 + $0x1c] ss:$80 sps:$4 sm:$0x3f]  }
  0x1c   :  { %2032 = vmatpush3.bf16.msra.mxu0 %v2244_v26  ;;  %v2296_v10 = vld [vmem:[%s2988_s1 + $0x200] sm:$0xff]   ;;  %v2302_v16 = vld [vmem:[%s2988_s1 + $0x250] sm:$0xff]   ;;  %v2306_v20 = vld [vmem:[%s2988_s1 + $0x258] sm:$0xff]  }
  0x1d   :  { %2054 = vmatpush3.bf16.msra.mxu1 %v2245_v27  ;;  %2033 = vmatprep.subr.bf16.mxu0 %v2246_v28  ;;  %v2297_v11 = vld [vmem:[%s2988_s1 + $0x280] sm:$0xff]   ;;  %v2303_v17 = vld [vmem:[%s2988_s1 + $0x2d0] sm:$0xff]   ;;  %v2307_v21 = vld [vmem:[%s2988_s1 + $0x2d8] sm:$0xff]  }
  0x1e   :  { %2055 = vmatprep.subr.bf16.mxu1 %v2247_v29  ;;  %v2304_v18 = vld [vmem:[%s2988_s1 + $0x210] sm:$0xff]   ;;  %v2308_v22 = vld [vmem:[%s2988_s1 + $0x218] sm:$0xff]   ;;  %v2310_v24 = vld [vmem:[%s2988_s1 + $0x260] sm:$0xff]  }
  0x1f   :  { %v2305_v19 = vld [vmem:[%s2988_s1 + $0x290] sm:$0xff]   ;;  %v2309_v23 = vld [vmem:[%s2988_s1 + $0x298] sm:$0xff]   ;;  %v2311_v25 = vld [vmem:[%s2988_s1 + $0x2e0] sm:$0xff]  }
  0x20   :  { %2034 = vmatpush3.bf16.msra.mxu0 %v2248_v30  ;;  %v2312_v26 = vld [vmem:[%s2988_s1 + $0x220] sm:$0xff]   ;;  %v2314_v28 = vld [vmem:[%s2988_s1 + $0x268] sm:$0xff]   ;;  %v2319_v33 = vld [vmem:[%s2988_s1 + $0x2f0] sm:$0xff]  }
  0x21   :  { %2056 = vmatpush3.bf16.msra.mxu1 %v2249_v31  ;;  %2063 = vmatprep.subr.bf16.mxu0 %v2256_v36  ;;  %v2313_v27 = vld [vmem:[%s2988_s1 + $0x2a0] sm:$0xff]   ;;  %v2315_v29 = vld [vmem:[%s2988_s1 + $0x2e8] sm:$0xff]   ;;  %v2321_v35 = vld [vmem:[%s2988_s1 + $0x2b0] sm:$0xff]  }
  0x22   :  { %2085 = vmatprep.subr.bf16.mxu1 %v2257_v37  ;;  %v2316_v30 = vld [vmem:[%s2988_s1 + $0x228] sm:$0xff]   ;;  %v2322_v36 = vld [vmem:[%s2988_s1 + $0x278] sm:$0xff]  }
  0x23   :  { %1442 = vmatmul.mubr.bf16.vlgmr.msra.gmra.mrb[0].mxu0 %v2250_v32  ;;  %v2317_v31 = vld [vmem:[%s2988_s1 + $0x2a8] sm:$0xff]   ;;  %v2318_v32 = vld [vmem:[%s2988_s1 + $0x270] sm:$0xff]   ;;  %v2323_v37 = vld [vmem:[%s2988_s1 + $0x2f8] sm:$0xff]  }
  0x24   :  { %1483 = vmatmul.mubr.bf16.vlgmr.msra.gmra.mrb[0].mxu1 %v2253_v34  ;;  %2064 = vmatpush3.bf16.msra.mxu0 %v2258_v38  ;;  %v2320_v34 = vld [vmem:[%s2988_s1 + $0x230] sm:$0xff]   ;;  %v2324_v38 = vld [vmem:[%s2988_s1 + $0x238] sm:$0xff]  }
  0x25   :  { %2086 = vmatpush3.bf16.msra.mxu1 %v2259_v39  ;;  %2065 = vmatprep.subr.bf16.mxu0 %v2260_v40  ;;  %v2325_v39 = vld [vmem:[%s2988_s1 + $0x2b8] sm:$0xff]   ;;  %v2326_v40 = vld [vmem:[%s2989_s0 + $0x20] ss:$80 sps:$4 sm:$0x3f]  }
  0x26   :  { %2087 = vmatprep.subr.bf16.mxu1 %v2261_v41  ;;  %1523 = vmatprep.mubr.bf16.mxu0 %v2290_v5  ;;  %v2328_v41 = vld [vmem:[%s2989_s0 + $0x24] ss:$80 sps:$4 sm:$0x3f]  }
  0x27   :  { %1564 = vmatprep.mubr.bf16.mxu1 %v2293_v7  ;;  %v2357_v5 = vld [vmem:[%s2988_s1 + $0x3f0] sm:$0xff]  }
  0x28   :  { %2066 = vmatpush3.bf16.msra.mxu0 %v2262_v42  ;;  %v2329_v42 = vld [vmem:[%s2989_s0 + $0x28] ss:$80 sps:$4 sm:$0x3f]   ;;  %v2359_v7 = vld [vmem:[%s2988_s1 + $0x3b0] sm:$0xff]  }
  0x29   :  { %2088 = vmatpush3.bf16.msra.mxu1 %v2263_v43  ;;  %2067 = vmatprep.subr.bf16.mxu0 %v2264_v44  ;;  %v2331_v43 = vld [vmem:[%s2989_s0 + $0x2c] ss:$80 sps:$4 sm:$0x3f]   ;;  %v2332_v44 = vld [vmem:[%s2988_s1 + $0x340] sm:$0xff]  }
  0x2a   :  { %2089 = vmatprep.subr.bf16.mxu1 %v2265_v45  ;;  %v2333_v45 = vld [vmem:[%s2988_s1 + $0x3c0] sm:$0xff]  }
  0x2c   :  { %2068 = vmatpush3.bf16.msra.mxu0 %v2266_v46  ;;  %v2334_v46 = vld [vmem:[%s2988_s1 + $0x300] sm:$0xff]  }
  0x2d   :  { %2090 = vmatpush3.bf16.msra.mxu1 %v2267_v47  ;;  %2069 = vmatprep.subr.bf16.mxu0 %v2268_v48  ;;  %v2335_v47 = vld [vmem:[%s2988_s1 + $0x380] sm:$0xff]   ;;  %v2336_v48 = vld [vmem:[%s2988_s1 + $0x348] sm:$0xff]  }
  0x2e   :  { %2091 = vmatprep.subr.bf16.mxu1 %v2269_v49  ;;  %v2337_v49 = vld [vmem:[%s2988_s1 + $0x3c8] sm:$0xff]  }
  0x30   :  { %2070 = vmatpush3.bf16.msra.mxu0 %v2270_v50  ;;  %v2338_v50 = vld [vmem:[%s2988_s1 + $0x308] sm:$0xff]  }
  0x31   :  { %2092 = vmatpush3.bf16.msra.mxu1 %v2271_v51  ;;  %2071 = vmatprep.subr.bf16.mxu0 %v2272_v52  ;;  %v2339_v51 = vld [vmem:[%s2988_s1 + $0x388] sm:$0xff]   ;;  %v2340_v52 = vld [vmem:[%s2988_s1 + $0x350] sm:$0xff]  }
  0x32   :  { %2093 = vmatprep.subr.bf16.mxu1 %v2273_v53  ;;  %v2341_v53 = vld [vmem:[%s2988_s1 + $0x3d0] sm:$0xff]  }
  0x34   :  { %2072 = vmatpush3.bf16.msra.mxu0 %v2274_v54  ;;  %v2342_v54 = vld [vmem:[%s2988_s1 + $0x310] sm:$0xff]  }
  0x35   :  { %2094 = vmatpush3.bf16.msra.mxu1 %v2275_v55  ;;  %2073 = vmatprep.subr.bf16.mxu0 %v2276_v56  ;;  %v2343_v55 = vld [vmem:[%s2988_s1 + $0x390] sm:$0xff]   ;;  %v2344_v56 = vld [vmem:[%s2988_s1 + $0x358] sm:$0xff]  }
  0x36   :  { %2095 = vmatprep.subr.bf16.mxu1 %v2277_v57  ;;  %v2345_v57 = vld [vmem:[%s2988_s1 + $0x3d8] sm:$0xff]  }
  0x38   :  { %2074 = vmatpush3.bf16.msra.mxu0 %v2278_v58  ;;  %v2346_v58 = vld [vmem:[%s2988_s1 + $0x318] sm:$0xff]  }
  0x39   :  { %2096 = vmatpush3.bf16.msra.mxu1 %v2279_v59  ;;  %2075 = vmatprep.subr.bf16.mxu0 %v2280_v60  ;;  %v2347_v59 = vld [vmem:[%s2988_s1 + $0x398] sm:$0xff]   ;;  %v2348_v60 = vld [vmem:[%s2988_s1 + $0x360] sm:$0xff]  }
  0x3a   :  { %2097 = vmatprep.subr.bf16.mxu1 %v2281_v61  ;;  %v2349_v61 = vld [vmem:[%s2988_s1 + $0x3e0] sm:$0xff]  }
  0x3c   :  { %2076 = vmatpush3.bf16.msra.mxu0 %v2282_v62  ;;  %v2350_v62 = vld [vmem:[%s2988_s1 + $0x320] sm:$0xff]  }
  0x3d   :  { %2098 = vmatpush3.bf16.msra.mxu1 %v2283_v63  ;;  %2077 = vmatprep.subr.bf16.mxu0 %v2284_v0  ;;  %v2351_v63 = vld [vmem:[%s2988_s1 + $0x3a0] sm:$0xff]   ;;  %v2352_v0 = vld [vmem:[%s2988_s1 + $0x368] sm:$0xff]  }
  0x3e   :  { %2099 = vmatprep.subr.bf16.mxu1 %v2285_v1  ;;  %v2353_v1 = vld [vmem:[%s2988_s1 + $0x3e8] sm:$0xff]  }
  0x40   :  { %2078 = vmatpush3.bf16.msra.mxu0 %v2286_v2  ;;  %v2354_v2 = vld [vmem:[%s2988_s1 + $0x328] sm:$0xff]  }
  0x41   :  { %2100 = vmatpush3.bf16.msra.mxu1 %v2287_v3  ;;  %2107 = vmatprep.subr.bf16.mxu0 %v2294_v8  ;;  %v2355_v3 = vld [vmem:[%s2988_s1 + $0x3a8] sm:$0xff]   ;;  %v2360_v8 = vld [vmem:[%s2988_s1 + $0x378] sm:$0xff]  }
  0x42   :  { %2129 = vmatprep.subr.bf16.mxu1 %v2295_v9  ;;  %v2361_v9 = vld [vmem:[%s2988_s1 + $0x3f8] sm:$0xff]  }
  0x43   :  { %1524 = vmatmul.mubr.bf16.vlgmr.msra.gmra.mrb[4].mxu0 %v2288_v4  ;;  %v2356_v4 = vld [vmem:[%s2988_s1 + $0x370] sm:$0xff]  }
  0x44   :  { %1565 = vmatmul.mubr.bf16.vlgmr.msra.gmra.mrb[4].mxu1 %v2291_v6  ;;  %2108 = vmatpush3.bf16.msra.mxu0 %v2296_v10  ;;  %v2358_v6 = vld [vmem:[%s2988_s1 + $0x330] sm:$0xff]   ;;  %v2362_v10 = vld [vmem:[%s2988_s1 + $0x338] sm:$0xff]  }
  0x45   :  { %2130 = vmatpush3.bf16.msra.mxu1 %v2297_v11  ;;  %2109 = vmatprep.subr.bf16.mxu0 %v2298_v12  ;;  %v2363_v11 = vld [vmem:[%s2988_s1 + $0x3b8] sm:$0xff]   ;;  %v2364_v12 = vld [vmem:[%s2989_s0 + $0x30] ss:$80 sps:$4 sm:$0x3f]  }
  0x46   :  { %2131 = vmatprep.subr.bf16.mxu1 %v2299_v13  ;;  %1605 = vmatprep.mubr.bf16.mxu0 %v2328_v41  ;;  %v2366_v13 = vld [vmem:[%s2989_s0 + $0x34] ss:$80 sps:$4 sm:$0x3f]   ;;  %v2393_v41 = vld [vmem:[%s2988_s1 + $0x4b8] sm:$0xff]  }
  0x47   :  { %1646 = vmatprep.mubr.bf16.mxu1 %v2331_v43  ;;  %v2403_v43 = vld [vmem:[%s2989_s0 + $0x4c] ss:$80 sps:$4 sm:$0x3f]  }
  0x48   :  { %2110 = vmatpush3.bf16.msra.mxu0 %v2300_v14  ;;  %v2367_v14 = vld [vmem:[%s2989_s0 + $0x38] ss:$80 sps:$4 sm:$0x3f]  }
  0x49   :  { %2132 = vmatpush3.bf16.msra.mxu1 %v2301_v15  ;;  %2111 = vmatprep.subr.bf16.mxu0 %v2302_v16  ;;  %v2369_v15 = vld [vmem:[%s2989_s0 + $0x3c] ss:$80 sps:$4 sm:$0x3f]   ;;  %v2410_v16 = vmov 0  }
  0x4a   :  { %2133 = vmatprep.subr.bf16.mxu1 %v2303_v17  ;;  %v2370_v17 = vld [vmem:[%s2988_s1 + $0x440] sm:$0xff]  }
  0x4c   :  { %2112 = vmatpush3.bf16.msra.mxu0 %v2304_v18  ;;  %v2371_v18 = vld [vmem:[%s2988_s1 + $0x400] sm:$0xff]  }
  0x4d   :  { %2134 = vmatpush3.bf16.msra.mxu1 %v2305_v19  ;;  %2113 = vmatprep.subr.bf16.mxu0 %v2306_v20  ;;  %v2372_v19 = vld [vmem:[%s2988_s1 + $0x480] sm:$0xff]   ;;  %v2373_v20 = vld [vmem:[%s2988_s1 + $0x448] sm:$0xff]  }
  0x4e   :  { %2135 = vmatprep.subr.bf16.mxu1 %v2307_v21  ;;  %v2374_v21 = vld [vmem:[%s2988_s1 + $0x408] sm:$0xff]  }
  0x50   :  { %2114 = vmatpush3.bf16.msra.mxu0 %v2308_v22  ;;  %v2375_v22 = vld [vmem:[%s2988_s1 + $0x488] sm:$0xff]  }
  0x51   :  { %2136 = vmatpush3.bf16.msra.mxu1 %v2309_v23  ;;  %2115 = vmatprep.subr.bf16.mxu0 %v2310_v24  ;;  %v2376_v23 = vld [vmem:[%s2988_s1 + $0x450] sm:$0xff]  }
  0x52   :  { %2137 = vmatprep.subr.bf16.mxu1 %v2311_v25  ;;  %v2377_v24 = vld [vmem:[%s2988_s1 + $0x410] sm:$0xff]  }
  0x53   :  { %v2378_v25 = vld [vmem:[%s2988_s1 + $0x490] sm:$0xff]  }
  0x54   :  { %2116 = vmatpush3.bf16.msra.mxu0 %v2312_v26  ;;  %v2379_v26 = vld [vmem:[%s2988_s1 + $0x458] sm:$0xff]  }
  0x55   :  { %2138 = vmatpush3.bf16.msra.mxu1 %v2313_v27  ;;  %2117 = vmatprep.subr.bf16.mxu0 %v2314_v28  ;;  %v2380_v27 = vld [vmem:[%s2988_s1 + $0x418] sm:$0xff]  }
  0x56   :  { %2139 = vmatprep.subr.bf16.mxu1 %v2315_v29  ;;  %v2381_v28 = vld [vmem:[%s2988_s1 + $0x498] sm:$0xff]   ;;  %v2382_v29 = vld [vmem:[%s2988_s1 + $0x460] sm:$0xff]  }
  0x58   :  { %2118 = vmatpush3.bf16.msra.mxu0 %v2316_v30  ;;  %v2383_v30 = vld [vmem:[%s2988_s1 + $0x420] sm:$0xff]  }
  0x59   :  { %2140 = vmatpush3.bf16.msra.mxu1 %v2317_v31  ;;  %2119 = vmatprep.subr.bf16.mxu0 %v2318_v32  ;;  %v2384_v31 = vld [vmem:[%s2988_s1 + $0x4a0] sm:$0xff]   ;;  %v2385_v32 = vld [vmem:[%s2988_s1 + $0x468] sm:$0xff]  }
  0x5a   :  { %2141 = vmatprep.subr.bf16.mxu1 %v2319_v33  ;;  %v2386_v33 = vld [vmem:[%s2988_s1 + $0x428] sm:$0xff]  }
  0x5c   :  { %2120 = vmatpush3.bf16.msra.mxu0 %v2320_v34  ;;  %v2387_v34 = vld [vmem:[%s2988_s1 + $0x4a8] sm:$0xff]  }
  0x5d   :  { %2142 = vmatpush3.bf16.msra.mxu1 %v2321_v35  ;;  %2121 = vmatprep.subr.bf16.mxu0 %v2322_v36  ;;  %v2388_v35 = vld [vmem:[%s2988_s1 + $0x470] sm:$0xff]  }
  0x5e   :  { %2143 = vmatprep.subr.bf16.mxu1 %v2323_v37  ;;  %v2389_v36 = vld [vmem:[%s2988_s1 + $0x430] sm:$0xff]  }
  0x5f   :  { %v2390_v37 = vld [vmem:[%s2988_s1 + $0x4b0] sm:$0xff]  }
  0x60   :  { %2122 = vmatpush3.bf16.msra.mxu0 %v2324_v38  ;;  %v2391_v38 = vld [vmem:[%s2988_s1 + $0x478] sm:$0xff]  }
  0x61   :  { %2144 = vmatpush3.bf16.msra.mxu1 %v2325_v39  ;;  %2151 = vmatprep.subr.bf16.mxu0 %v2332_v44  ;;  %v2396_v39 = vld [vmem:[%s2989_s0 + $0x44] ss:$80 sps:$4 sm:$0x3f]  }
  0x62   :  { %2173 = vmatprep.subr.bf16.mxu1 %v2333_v45  ;;  %v2397_v44 = vld [vmem:[%s2988_s1 + $0x4c0] sm:$0xff]   ;;  %v2398_v45 = vld [vmem:[%s2988_s1 + $0x4c8] sm:$0xff]  }
  0x63   :  { %1606 = vmatmul.mubr.bf16.vlgmr.msra.gmra.mrb[8].mxu0 %v2326_v40  ;;  %v2392_v40 = vld [vmem:[%s2988_s1 + $0x438] sm:$0xff]  }
  0x64   :  { %1647 = vmatmul.mubr.bf16.vlgmr.msra.gmra.mrb[8].mxu1 %v2329_v42  ;;  %2152 = vmatpush3.bf16.msra.mxu0 %v2334_v46  ;;  %v2394_v42 = vld [vmem:[%s2989_s0 + $0x40] ss:$80 sps:$4 sm:$0x3f]  }
  0x65   :  { %2174 = vmatpush3.bf16.msra.mxu1 %v2335_v47  ;;  %2153 = vmatprep.subr.bf16.mxu0 %v2336_v48  ;;  %v2399_v46 = vld [vmem:[%s2988_s1 + $0x4d0] sm:$0xff]   ;;  %v2400_v47 = vld [vmem:[%s2988_s1 + $0x4d8] sm:$0xff]   ;;  %v2401_v48 = vld [vmem:[%s2988_s1 + $0x4e0] sm:$0xff]  }
  0x66   :  { %2175 = vmatprep.subr.bf16.mxu1 %v2337_v49  ;;  %1687 = vmatprep.mubr.bf16.mxu0 %v2366_v13  ;;  %v2402_v49 = vld [vmem:[%s2988_s1 + $0x4e8] ss:$0 sps:$4 sm:$0xff]  }
  0x67   :  { %1728 = vmatprep.mubr.bf16.mxu1 %v2369_v15 }
  0x68   :  { %2154 = vmatpush3.bf16.msra.mxu0 %v2338_v50  ;;  %v1407_v50 = vsel %vm1405_vm1, %v2402_v49, 0 }
  0x69   :  { %2176 = vmatpush3.bf16.msra.mxu1 %v2339_v51  ;;  %2155 = vmatprep.subr.bf16.mxu0 %v2340_v52  ;;  %v2405_v51 = vld [vmem:[%s2989_s0 + $0x48] ss:$80 sps:$4 sm:$0x3f]  }
  0x6a   :  { %2177 = vmatprep.subr.bf16.mxu1 %v2341_v53 }
  0x6c   :  { %2156 = vmatpush3.bf16.msra.mxu0 %v2342_v54  ;;  %v1837_v54 = vld [vmem:[%s2990_s2] ss:$0 sm:$0xff] }
  0x6d   :  { %2178 = vmatpush3.bf16.msra.mxu1 %v2343_v55  ;;  %2157 = vmatprep.subr.bf16.mxu0 %v2344_v56 }
  0x6e   :  { %2179 = vmatprep.subr.bf16.mxu1 %v2345_v57 }
  0x70   :  { %2158 = vmatpush3.bf16.msra.mxu0 %v2346_v58 }
  0x71   :  { %2180 = vmatpush3.bf16.msra.mxu1 %v2347_v59  ;;  %2159 = vmatprep.subr.bf16.mxu0 %v2348_v60 }
  0x72   :  { %2181 = vmatprep.subr.bf16.mxu1 %v2349_v61 }
  0x74   :  { %2160 = vmatpush3.bf16.msra.mxu0 %v2350_v62 }
  0x75   :  { %2182 = vmatpush3.bf16.msra.mxu1 %v2351_v63  ;;  %2161 = vmatprep.subr.bf16.mxu0 %v2352_v0 }
  0x76   :  { %2183 = vmatprep.subr.bf16.mxu1 %v2353_v1 }
  0x78   :  { %2162 = vmatpush3.bf16.msra.mxu0 %v2354_v2 }
  0x79   :  { %2184 = vmatpush3.bf16.msra.mxu1 %v2355_v3  ;;  %2163 = vmatprep.subr.bf16.mxu0 %v2356_v4 }
  0x7a   :  { %2185 = vmatprep.subr.bf16.mxu1 %v2357_v5 }
  0x7c   :  { %2164 = vmatpush3.bf16.msra.mxu0 %v2358_v6 }
  0x7d   :  { %2186 = vmatpush3.bf16.msra.mxu1 %v2359_v7  ;;  %2165 = vmatprep.subr.bf16.mxu0 %v2360_v8 }
  0x7e   :  { %2187 = vmatprep.subr.bf16.mxu1 %v2361_v9 }
  0x80   :  { %2166 = vmatpush3.bf16.msra.mxu0 %v2362_v10 }
  0x81   :  { %2188 = vmatpush3.bf16.msra.mxu1 %v2363_v11  ;;  %2195 = vmatprep.subr.bf16.mxu0 %v2370_v17 }
  0x82   :  { %1778 = vmatprep.subr.bf16.mxu1 %v2410_v16 }
  0x83   :  { %1688 = vmatmul.mubr.bf16.vlgmr.msra.gmra.mrb[12].mxu0 %v2364_v12 }
  0x84   :  { %1729 = vmatmul.mubr.bf16.vlgmr.msra.gmra.mrb[12].mxu1 %v2367_v14  ;;  %2196 = vmatpush3.bf16.msra.mxu0 %v2371_v18 }
  0x85   :  { %1779 = vmatpush1.bf16.msra.mxu1 %v2372_v19  ;;  %2197 = vmatprep.subr.bf16.mxu0 %v2373_v20 }
  0x86   :  { %1780 = vmatprep.subr.bf16.mxu1 %v2410_v16  ;;  %1769 = vmatprep.mubr.bf16.mxu0 %v2396_v39 }
  0x87   :  { %2016 = vmatprep.mubr.msk.bf16.mxu1 %vm1401_vm0, %v2403_v43 }
  0x88   :  { %2198 = vmatpush3.bf16.msra.mxu0 %v2374_v21 }
  0x89   :  { %1781 = vmatpush1.bf16.msra.mxu1 %v2375_v22  ;;  %2199 = vmatprep.subr.bf16.mxu0 %v2376_v23 }
  0x8a   :  { %1782 = vmatprep.subr.bf16.mxu1 %v2410_v16 }
  0x8c   :  { %2200 = vmatpush3.bf16.msra.mxu0 %v2377_v24 }
  0x8d   :  { %1783 = vmatpush1.bf16.msra.mxu1 %v2378_v25  ;;  %2201 = vmatprep.subr.bf16.mxu0 %v2379_v26 }
  0x8e   :  { %1784 = vmatprep.subr.bf16.mxu1 %v2410_v16 }
  0x90   :  { %2202 = vmatpush3.bf16.msra.mxu0 %v2380_v27 }
  0x91   :  { %1785 = vmatpush1.bf16.msra.mxu1 %v2381_v28  ;;  %2203 = vmatprep.subr.bf16.mxu0 %v2382_v29 }
  0x92   :  { %1786 = vmatprep.subr.bf16.mxu1 %v2410_v16 }
  0x94   :  { %2204 = vmatpush3.bf16.msra.mxu0 %v2383_v30 }
  0x95   :  { %1787 = vmatpush1.bf16.msra.mxu1 %v2384_v31  ;;  %2205 = vmatprep.subr.bf16.mxu0 %v2385_v32 }
  0x96   :  { %1788 = vmatprep.subr.bf16.mxu1 %v2410_v16 }
  0x98   :  { %2206 = vmatpush3.bf16.msra.mxu0 %v2386_v33 }
  0x99   :  { %1789 = vmatpush1.bf16.msra.mxu1 %v2387_v34  ;;  %2207 = vmatprep.subr.bf16.mxu0 %v2388_v35 }
  0x9a   :  { %1790 = vmatprep.subr.bf16.mxu1 %v2410_v16 }
  0x9c   :  { %2208 = vmatpush3.bf16.msra.mxu0 %v2389_v36 }
  0x9d   :  { %1791 = vmatpush1.bf16.msra.mxu1 %v2390_v37  ;;  %2209 = vmatprep.subr.bf16.mxu0 %v2391_v38 }
  0x9e   :  { %1792 = vmatprep.subr.bf16.mxu1 %v2410_v16 }
  0xa0   :  { %2210 = vmatpush3.bf16.msra.mxu0 %v2392_v40 }
  0xa1   :  { %1793 = vmatpush1.bf16.msra.mxu1 %v2393_v41 }
  0xa2   :  { %1794 = vmatprep.subr.bf16.mxu1 %v2410_v16 }
  0xa3   :  { %1770 = vmatmul.mubr.bf16.vlgmr.msra.gmra.mrb[16].mxu0 %v2394_v42 }
  0xa5   :  { %1795 = vmatpush1.bf16.msra.mxu1 %v2397_v44 }
  0xa6   :  { %1796 = vmatprep.subr.bf16.mxu1 %v2410_v16 }
  0xa9   :  { %1797 = vmatpush1.bf16.msra.mxu1 %v2398_v45 }
  0xaa   :  { %1798 = vmatprep.subr.bf16.mxu1 %v2410_v16 }
  0xad   :  { %1799 = vmatpush1.bf16.msra.mxu1 %v2399_v46 }
  0xae   :  { %1800 = vmatprep.subr.bf16.mxu1 %v2410_v16 }
  0xb1   :  { %1801 = vmatpush1.bf16.msra.mxu1 %v2400_v47 }
  0xb2   :  { %1802 = vmatprep.subr.bf16.mxu1 %v2410_v16 }
  0xb5   :  { %1803 = vmatpush1.bf16.msra.mxu1 %v2401_v48 }
  0xb6   :  { %1804 = vmatprep.subr.bf16.mxu1 %v2410_v16 }
  0xb9   :  { %1805 = vmatpush1.bf16.msra.mxu1 %v1407_v50 }
  0xbc   :  { %1811 = vmatmul.mubr.bf16.vlgmr.msra.gmra.mrb[16].mxu1 %v2405_v51 }
  0xf6   :  { %v2035_v52 = vpop.f32.mrb[0].mxu0 }
  0xf7   :  { %v2057_v53 = vpop.f32.mrb[0].mxu1  ;;  %v2036_v55 = vpop.f32.mrb[1].mxu0 }
  0xf8   :  { %v2037_v56 = vadd.f32 %v2036_v55, %v2035_v52  ;;  %v2058_v57 = vpop.f32.mrb[1].mxu1  ;;  %v2038_v58 = vpop.f32.mrb[2].mxu0 }
  0xf9   :  { %v2059_v59 = vadd.f32 %v2058_v57, %v2057_v53  ;;  %v2060_v60 = vpop.f32.mrb[2].mxu1  ;;  %v2039_v61 = vpop.f32.mrb[3].mxu0 }
  0xfa   :  { %v1444_v62 = vadd.f32 %v2037_v56, %v1837_v54  ;;  %v2040_v63 = vadd.f32 %v2039_v61, %v2038_v58  ;;  %v2061_v0 = vpop.f32.mrb[3].mxu1 }
  0xfb   :  { %v2062_v1 = vadd.f32 %v2061_v0, %v2060_v60 }
  0xfc   :  { %v1485_v2 = vadd.f32 %v2059_v59, %v1444_v62  ;;  %v1447_v3 = vadd.f32 %v2040_v63, %v1837_v54 }
  0xfe   :  { %v1488_v4 = vadd.f32 %v2062_v1, %v1447_v3 }
 0x116   :  { %v2079_v5 = vpop.f32.mrb[4].mxu0 }
 0x117   :  { %v2101_v6 = vpop.f32.mrb[4].mxu1  ;;  %v2080_v7 = vpop.f32.mrb[5].mxu0 }
 0x118   :  { %v2081_v8 = vadd.f32 %v2080_v7, %v2079_v5  ;;  %v2102_v9 = vpop.f32.mrb[5].mxu1  ;;  %v2082_v10 = vpop.f32.mrb[6].mxu0 }
 0x119   :  { %v2103_v11 = vadd.f32 %v2102_v9, %v2101_v6  ;;  %v2104_v12 = vpop.f32.mrb[6].mxu1  ;;  %v2083_v13 = vpop.f32.mrb[7].mxu0 }
 0x11a   :  { %v1526_v14 = vadd.f32 %v2081_v8, %v1485_v2  ;;  %v2084_v15 = vadd.f32 %v2083_v13, %v2082_v10  ;;  %v2105_v16 = vpop.f32.mrb[7].mxu1 }
 0x11b   :  { %v2106_v17 = vadd.f32 %v2105_v16, %v2104_v12 }
 0x11c   :  { %v1567_v18 = vadd.f32 %v2103_v11, %v1526_v14  ;;  %v1529_v19 = vadd.f32 %v2084_v15, %v1488_v4 }
 0x11e   :  { %v1570_v20 = vadd.f32 %v2106_v17, %v1529_v19 }
 0x136   :  { %v2123_v21 = vpop.f32.mrb[8].mxu0 }
 0x137   :  { %v2145_v22 = vpop.f32.mrb[8].mxu1  ;;  %v2124_v23 = vpop.f32.mrb[9].mxu0 }
 0x138   :  { %v2125_v24 = vadd.f32 %v2124_v23, %v2123_v21  ;;  %v2146_v25 = vpop.f32.mrb[9].mxu1  ;;  %v2126_v26 = vpop.f32.mrb[10].mxu0 }
 0x139   :  { %v2147_v27 = vadd.f32 %v2146_v25, %v2145_v22  ;;  %v2148_v28 = vpop.f32.mrb[10].mxu1  ;;  %v2127_v29 = vpop.f32.mrb[11].mxu0 }
 0x13a   :  { %v1608_v30 = vadd.f32 %v2125_v24, %v1567_v18  ;;  %v2128_v31 = vadd.f32 %v2127_v29, %v2126_v26  ;;  %v2149_v32 = vpop.f32.mrb[11].mxu1 }
 0x13b   :  { %v2150_v33 = vadd.f32 %v2149_v32, %v2148_v28 }
 0x13c   :  { %v1649_v34 = vadd.f32 %v2147_v27, %v1608_v30  ;;  %v1611_v35 = vadd.f32 %v2128_v31, %v1570_v20 }
 0x13e   :  { %v1652_v36 = vadd.f32 %v2150_v33, %v1611_v35 }
 0x156   :  { %v2167_v37 = vpop.f32.mrb[12].mxu0 }
 0x157   :  { %v2189_v38 = vpop.f32.mrb[12].mxu1  ;;  %v2168_v39 = vpop.f32.mrb[13].mxu0 }
 0x158   :  { %v2169_v40 = vadd.f32 %v2168_v39, %v2167_v37  ;;  %v2190_v41 = vpop.f32.mrb[13].mxu1  ;;  %v2170_v42 = vpop.f32.mrb[14].mxu0 }
 0x159   :  { %v2191_v43 = vadd.f32 %v2190_v41, %v2189_v38  ;;  %v2192_v44 = vpop.f32.mrb[14].mxu1  ;;  %v2171_v45 = vpop.f32.mrb[15].mxu0 }
 0x15a   :  { %v1690_v46 = vadd.f32 %v2169_v40, %v1649_v34  ;;  %v2172_v47 = vadd.f32 %v2171_v45, %v2170_v42  ;;  %v2193_v48 = vpop.f32.mrb[15].mxu1 }
 0x15b   :  { %v2194_v49 = vadd.f32 %v2193_v48, %v2192_v44 }
 0x15c   :  { %v1731_v50 = vadd.f32 %v2191_v43, %v1690_v46  ;;  %v1693_v51 = vadd.f32 %v2172_v47, %v1652_v36 }
 0x15e   :  { %v1734_v52 = vadd.f32 %v2194_v49, %v1693_v51 }
 0x176   :  { %v2211_v53 = vpop.f32.mrb[16].mxu0 }
 0x177   :  { %v2212_v54 = vpop.f32.mrb[17].mxu0 }
 0x178   :  { %v2213_v55 = vadd.f32 %v2212_v54, %v2211_v53  ;;  %v2214_v56 = vpop.f32.mrb[18].mxu0 }
 0x179   :  { %v2215_v57 = vpop.f32.mrb[19].mxu0 }
 0x17a   :  { %v2216_v58 = vadd.f32 %v2215_v57, %v2214_v56  ;;  %v1772_v59 = vadd.f32 %v2213_v55, %v1731_v50 }
 0x17c   :  { %v1775_v60 = vadd.f32 %v2216_v58, %v1734_v52 }
 0x18f   :  { %v1812_v61 = vpop.f32.mrb[16].mxu1 }
 0x190   :  { %v1813_v62 = vadd.f32 %v1812_v61, %v1772_v59  ;;  %v1814_v63 = vpop.f32.mrb[17].mxu1 }
 0x191   :  { %v1815_v0 = vpop.f32.mrb[18].mxu1 }
 0x192   :  { %v1821_v1 = vmul.f32 1.442695, %v1813_v62  ;;  %v1816_v2 = vadd.f32 %v1815_v0, %v1775_v60  ;;  %v1817_v3 = vpop.f32.mrb[19].mxu1  ;;  %vm1819_vm3 = vcmp.gt.f32.partialorder %v1813_v62, 0.0 }
 0x194   :  { %2406 = vpow2.f32 %v1821_v1  ;;  %v1823_v4 = vmul.f32 1.442695, %v1816_v2  ;;  %vm1820_vm5 = vcmp.gt.f32.partialorder %v1816_v2, 0.0 }
 0x196   :  { %2408 = vpow2.f32 %v1823_v4 }
 0x19e   :  { %v2407_v5 = vpop.eup %2406 }
 0x19f   :  { %v2017_v6 = vadd.f32 -1.0, %v2407_v5 }
 0x1a0   :  { %v2409_v7 = vpop.eup %2408 }
 0x1a1   :  { %v1827_v8 = vsel %vm1819_vm3, %v1813_v62, %v2017_v6  ;;  %v2018_v9 = vadd.f32 -1.0, %v2409_v7 }
 0x1a2   :  { %1830 = vst.msk [vmem:[%s2991_s3] sm:$0xff] %vm1829_vm2, %v1827_v8 }
 0x1a3   :  { %v1828_v10 = vsel %vm1820_vm5, %v1816_v2, %v2018_v9 }
 0x1a4   :  { %1832 = vst.msk [vmem:[%s2991_s3 + $0x8] sm:$0xf] %vm1831_vm4, %v1828_v10 }

</bundles_post_ra>
